<compile_context>
chip_gen: v7x
topology: tpu7x:2x2x1
jax: 0.10.0
libtpu: 0.0.40
codegen_flags: <defaults>
</compile_context>

<pallas_src>
import functools

import jax
import jax.numpy as jnp
import numpy as np
from jax.experimental import pallas as pl
from jax.experimental.pallas import tpu as pltpu

LANE = 128
KH = KW = 5
TAPS = KH * KW
WBIG = 2 * KW - 1                 # 9: big-window width covering all 5 column taps
C1, C2, F1 = 20, 50, 100          # conv1/conv2/fc1 output features (PyTorch spec)


def _round_up(x, m):
    return (x + m - 1) // m * m


# ------------------------------ fused kernel ------------------------------- #

def _lenet_kernel(x_ref, w1_ref, b1_ref, w2_ref, b2_ref,
                  fc1w_ref, fc1b_ref, fc2w_ref, fc2b_ref,
                  o_ref, pooled_ref, *, batch, rows2, rows2_pad):
    """Fused LeNet forward for a tile of `batch` images (one grid step)."""
    f32, bf16 = jnp.float32, jnp.bfloat16

    # ---- conv1 + relu1, computed directly in conv2-packed layout ----------
    # x_ref[i] : (batch*rows2_pad, 256) big-patch rows for conv2 kernel-row i.
    # One MXU dot per slab (K=256); output lane j*20+c = relu(conv1) at column
    # offset j, i.e. the packed conv2 patch slab.  No accumulate chain.
    slabs = []
    for i in range(KH):
        s = jnp.dot(x_ref[i], w1_ref[...], preferred_element_type=f32)
        s = jnp.maximum(s + b1_ref[...], 0.0)                  # f32 bias + relu
        slabs.append(s.astype(bf16))

    # ---- conv2 + relu2: one K=640 contraction (all 25 taps folded into K) --
    hcat = jnp.concatenate(slabs, axis=-1)                     # (B*rows2_pad, 640)
    h2 = jnp.dot(hcat, w2_ref[...], preferred_element_type=f32)
    h2 = jnp.maximum(h2 + b2_ref[...], 0.0)                    # (B*rows2_pad, 128) f32

    # ---- global average pool: f32 VPU/XLU sublane reduction per image ------
    inv = 1.0 / rows2
    for b in range(batch):
        blk = h2[b * rows2_pad: b * rows2_pad + rows2, :]
        pooled_ref[b:b + 1, :] = jnp.sum(blk, axis=0, keepdims=True) * inv

    # ---- fc1 + relu3 + fc2 at M = batch ------------------------------------
    pooled = pooled_ref[...]                                    # (B, 128) f32
    z = jnp.dot(pooled.astype(bf16), fc1w_ref[...],
                preferred_element_type=f32) + fc1b_ref[...]
    z = jnp.maximum(z, 0.0)
    o = jnp.dot(z.astype(bf16), fc2w_ref[...],
                preferred_element_type=f32) + fc2b_ref[...]
    o_ref[...] = o.astype(o_ref.dtype)                          # (B, clsp)


# --------------------------------- wrapper --------------------------------- #

def _pick_batch_tile(n, target=8):
    b = min(target, max(1, n))
    if n >= 2:
        b = min(b, n // 2)          # keep grid length >= 2 (both v7x TensorCores)
    return max(1, b)


def lenet_forward(x_nchw, params, *, batch_tile=None):
    n, cin, H, W = x_nchw.shape
    classes = params["fc2_b"].shape[0]
    clsp = _round_up(classes, LANE)

    oh1, ow1 = H - KH + 1, W - KW + 1
    oh2, ow2 = oh1 - KH + 1, ow1 - KW + 1
    assert oh2 > 0 and ow2 > 0, "input too small for two valid 5x5 convs"
    rows2 = oh2 * ow2                       # tight conv2-output rows (all valid)
    rows2_pad = _round_up(rows2, 8)
    k1 = KH * WBIG * cin                    # big-patch contraction depth (180)
    k1p = _round_up(k1, LANE)               # 256
    k2p = KH * LANE                         # 640: 5 packed conv2 K-slabs

    B = batch_tile if batch_tile is not None else _pick_batch_tile(n)
    n_pad = _round_up(n, B)
    n_steps = n_pad // B

    # ---- big-patch im2col of x (lane-dense 256-lane rows, bf16) ------------
    xs = jnp.transpose(x_nchw, (0, 2, 3, 1)).astype(jnp.float32)   # (n,H,W,cin)
    if n_pad > n:
        xs = jnp.pad(xs, ((0, n_pad - n), (0, 0), (0, 0), (0, 0)))
    slab_list = []
    for i in range(KH):
        pats = []
        for a in range(KH):
            for bb in range(WBIG):
                pats.append(xs[:, i + a: i + a + oh2, bb: bb + ow2, :])
        p = jnp.stack(pats, axis=3)                     # (n_pad, oh2, ow2, 45, cin)
        slab_list.append(p.reshape(n_pad, rows2, k1))
    xpat = jnp.stack(slab_list, axis=0)                 # (KH, n_pad, rows2, k1)
    xpat = jnp.pad(xpat, ((0, 0), (0, 0), (0, rows2_pad - rows2), (0, k1p - k1)))
    xpat = xpat.astype(jnp.bfloat16).reshape(KH, n_pad * rows2_pad, k1p)

    # ---- conv1 weights in "big patch -> packed slab" layout ----------------
    # w1big[(a*9+bb)*cin + ci, j*C1 + c] = W1[a, bb-j, ci, c]   (0 <= bb-j < 5)
    w1 = params["conv1_w"].astype(jnp.float32)          # HWIO (5,5,cin,C1)
    cols = []
    for j in range(KW):
        m = jnp.zeros((KH, WBIG, cin, C1), jnp.float32)
        m = m.at[:, j:j + KW, :, :].set(w1)
        cols.append(m.reshape(KH * WBIG * cin, C1))
    w1big = jnp.concatenate(cols, axis=1)               # (k1, KW*C1=100)
    w1big = jnp.pad(w1big, ((0, k1p - k1), (0, LANE - KW * C1))).astype(jnp.bfloat16)
    b1t = jnp.pad(jnp.tile(params["conv1_b"].astype(jnp.float32), KW),
                  (0, LANE - KW * C1)).reshape(1, LANE)

    # ---- conv2 weights packed to match the slab lane layout -----------------
    # w2p[i*128 + j*C1 + c, o] = W2[i, j, c, o]
    w2 = params["conv2_w"].astype(jnp.float32)          # HWIO (5,5,C1,C2)
    blocks = []
    for i in range(KH):
        blk = w2[i].reshape(KW * C1, C2)
        blocks.append(jnp.pad(blk, ((0, LANE - KW * C1), (0, LANE - C2))))
    w2p = jnp.concatenate(blocks, axis=0).astype(jnp.bfloat16)   # (640, 128)
    b2t = jnp.pad(params["conv2_b"].astype(jnp.float32),
                  (0, LANE - C2)).reshape(1, LANE)

    fc1w = jnp.pad(params["fc1_w"], ((0, LANE - C2), (0, LANE - F1))).astype(jnp.bfloat16)
    fc1b = jnp.pad(params["fc1_b"], (0, LANE - F1)).reshape(1, LANE).astype(jnp.float32)
    fc2w = jnp.pad(params["fc2_w"], ((0, LANE - F1), (0, clsp - classes))).astype(jnp.bfloat16)
    fc2b = jnp.pad(params["fc2_b"], (0, clsp - classes)).reshape(1, clsp).astype(jnp.float32)

    kernel = functools.partial(_lenet_kernel, batch=B, rows2=rows2,
                               rows2_pad=rows2_pad)

    flops = 2 * n_pad * (KH * rows2_pad * k1p * LANE            # packed conv1 slabs
                         + rows2_pad * k2p * LANE               # conv2
                         + LANE * LANE + LANE * clsp)           # fc1 + fc2
    bytes_accessed = (2 * (xpat.size + w1big.size + w2p.size + fc1w.size + fc2w.size)
                      + 4 * (b1t.size + b2t.size + fc1b.size + fc2b.size
                             + n_pad * clsp))

    out = pl.pallas_call(
        kernel,
        out_shape=jax.ShapeDtypeStruct((n_steps, B, clsp), jnp.float32),
        grid_spec=pltpu.PrefetchScalarGridSpec(
            num_scalar_prefetch=0,
            grid=(n_steps,),
            in_specs=[
                pl.BlockSpec((KH, B * rows2_pad, k1p), lambda g: (0, g, 0)),  # x patches
                pl.BlockSpec((k1p, LANE), lambda g: (0, 0)),                  # conv1 packed w
                pl.BlockSpec((1, LANE), lambda g: (0, 0)),                    # b1 (tiled)
                pl.BlockSpec((k2p, LANE), lambda g: (0, 0)),                  # conv2 packed w
                pl.BlockSpec((1, LANE), lambda g: (0, 0)),                    # b2
                pl.BlockSpec((LANE, LANE), lambda g: (0, 0)),                 # fc1 w
                pl.BlockSpec((1, LANE), lambda g: (0, 0)),                    # fc1 b
                pl.BlockSpec((LANE, clsp), lambda g: (0, 0)),                 # fc2 w
                pl.BlockSpec((1, clsp), lambda g: (0, 0)),                    # fc2 b
            ],
            out_specs=pl.BlockSpec((None, B, clsp), lambda g: (g, 0, 0)),
            scratch_shapes=[pltpu.VMEM((B, LANE), jnp.float32)],              # pooled rows
        ),
        compiler_params=pltpu.CompilerParams(dimension_semantics=("parallel",)),
        cost_estimate=pl.CostEstimate(flops=flops, transcendentals=0,
                                      bytes_accessed=bytes_accessed),
    )(xpat, w1big, b1t, w2p, b2t, fc1w, fc1b, fc2w, fc2b)

    return out.reshape(n_pad, clsp)[:n, :classes]                # (N, classes) f32


# ------------------------------ params & reference ------------------------- #

def init_params(key, num_channels, classes):
    ks = jax.random.split(key, 8)
    return {
        # HWIO conv weights (PyTorch OIHW transposed to (2, 3, 1, 0))
        "conv1_w": jax.random.normal(ks[0], (5, 5, num_channels, C1), jnp.float32) * 0.1,
        "conv1_b": jax.random.normal(ks[1], (C1,), jnp.float32) * 0.1,
        "conv2_w": jax.random.normal(ks[2], (5, 5, C1, C2), jnp.float32) * 0.05,
        "conv2_b": jax.random.normal(ks[3], (C2,), jnp.float32) * 0.1,
        "fc1_w": jax.random.normal(ks[4], (C2, F1), jnp.float32) * 0.1,
        "fc1_b": jax.random.normal(ks[5], (F1,), jnp.float32) * 0.1,
        "fc2_w": jax.random.normal(ks[6], (F1, classes), jnp.float32) * 0.1,
        "fc2_b": jax.random.normal(ks[7], (classes,), jnp.float32) * 0.1,
    }


def _im2col(x, kh, kw):
    n, h, w, c = x.shape
    oh, ow = h - kh + 1, w - kw + 1
    cols = [x[:, i:i + oh, j:j + ow, :] for i in range(kh) for j in range(kw)]
    return jnp.concatenate(cols, axis=-1).reshape(n * oh * ow, kh * kw * c), (n, oh, ow)


def lenet_reference(x_nchw, params):
    """Pure-JAX reference with the same layer structure as the PyTorch forward.
    Operands are cast to bf16 at the same points as the kernel (f32 accumulation)
    so the comparison tolerance can stay tight."""
    bf16, f32 = jnp.bfloat16, jnp.float32
    x = jnp.transpose(x_nchw, (0, 2, 3, 1))
    cin = x.shape[-1]

    p1, (n, oh1, ow1) = _im2col(x.astype(bf16), KH, KW)
    h1 = jnp.maximum(jnp.dot(p1, params["conv1_w"].reshape(TAPS * cin, C1).astype(bf16),
                             preferred_element_type=f32) + params["conv1_b"], 0.0)
    h1 = h1.reshape(n, oh1, ow1, C1)

    p2, (n, oh2, ow2) = _im2col(h1.astype(bf16), KH, KW)
    h2 = jnp.maximum(jnp.dot(p2, params["conv2_w"].reshape(TAPS * C1, C2).astype(bf16),
                             preferred_element_type=f32) + params["conv2_b"], 0.0)
    h2 = h2.reshape(n, oh2, ow2, C2)

    pooled = jnp.mean(h2, axis=(1, 2))
    z = jnp.maximum(jnp.dot(pooled.astype(bf16), params["fc1_w"].astype(bf16),
                            preferred_element_type=f32) + params["fc1_b"], 0.0)
    return jnp.dot(z.astype(bf16), params["fc2_w"].astype(bf16),
                   preferred_element_type=f32) + params["fc2_b"]


if __name__ == "__main__":
    num_channels, classes = 4, 10
    key = jax.random.PRNGKey(0)
    k_x, k_p = jax.random.split(key)

    x = jax.random.normal(k_x, (2, num_channels, 16, 16), jnp.float32)  # NCHW
    params = init_params(k_p, num_channels, classes)

    out = jax.block_until_ready(jax.jit(lenet_forward)(x, params))
    ref = jax.block_until_ready(lenet_reference(x, params))

    assert out.shape == (2, classes), out.shape
    np.testing.assert_allclose(np.asarray(out), np.asarray(ref), rtol=1e-2, atol=1e-2)
    print("KERNEL_OK")
</pallas_src>

<mosaic_0001>
module attributes {stable_mosaic.version = 11 : i64} {
  func.func @_lenet_kernel(%arg0: i32, %arg1: memref<5x64x256xbf16, #tpu.memory_space<vmem>>, %arg2: memref<256x128xbf16, #tpu.memory_space<vmem>>, %arg3: memref<1x128xf32, #tpu.memory_space<vmem>>, %arg4: memref<640x128xbf16, #tpu.memory_space<vmem>>, %arg5: memref<1x128xf32, #tpu.memory_space<vmem>>, %arg6: memref<128x128xbf16, #tpu.memory_space<vmem>>, %arg7: memref<1x128xf32, #tpu.memory_space<vmem>>, %arg8: memref<128x128xbf16, #tpu.memory_space<vmem>>, %arg9: memref<1x128xf32, #tpu.memory_space<vmem>>, %arg10: memref<1x1x128xf32, #tpu.memory_space<vmem>>, %arg11: memref<1x128xf32, #tpu.memory_space<vmem>>) attributes {dimension_semantics = [#tpu.dimension_semantics<parallel>], iteration_bounds = array<i64: 2>, scalar_prefetch = 0 : i64, scratch_operands = 1 : i64, tpu.core_type = #tpu.core_type<tc>, window_params = [{transform_indices = @transform_0, window_bounds = array<i64: 5, 64, 256>}, {pipeline_mode = #tpu.pipeline_mode<synchronous>, transform_indices = @transform_1, window_bounds = array<i64: 256, 128>}, {pipeline_mode = #tpu.pipeline_mode<synchronous>, transform_indices = @transform_2, window_bounds = array<i64: 1, 128>}, {pipeline_mode = #tpu.pipeline_mode<synchronous>, transform_indices = @transform_3, window_bounds = array<i64: 640, 128>}, {pipeline_mode = #tpu.pipeline_mode<synchronous>, transform_indices = @transform_4, window_bounds = array<i64: 1, 128>}, {pipeline_mode = #tpu.pipeline_mode<synchronous>, transform_indices = @transform_5, window_bounds = array<i64: 128, 128>}, {pipeline_mode = #tpu.pipeline_mode<synchronous>, transform_indices = @transform_6, window_bounds = array<i64: 1, 128>}, {pipeline_mode = #tpu.pipeline_mode<synchronous>, transform_indices = @transform_7, window_bounds = array<i64: 128, 128>}, {pipeline_mode = #tpu.pipeline_mode<synchronous>, transform_indices = @transform_8, window_bounds = array<i64: 1, 128>}, {transform_indices = @transform_9, window_bounds = array<i64: 1, 1, 128>}]} {
    %c0 = arith.constant 0 : index
    %c0_0 = arith.constant 0 : index
    %c0_1 = arith.constant 0 : index
    %0 = vector.load %arg1[%c0, %c0_0, %c0_1] : memref<5x64x256xbf16, #tpu.memory_space<vmem>>, vector<1x64x256xbf16>
    %1 = vector.shape_cast %0 : vector<1x64x256xbf16> to vector<64x256xbf16>
    %c0_2 = arith.constant 0 : index
    %c0_3 = arith.constant 0 : index
    %2 = vector.load %arg2[%c0_2, %c0_3] : memref<256x128xbf16, #tpu.memory_space<vmem>>, vector<256x128xbf16>
    %cst = arith.constant dense<0.000000e+00> : vector<64x128xf32>
    %3 = tpu.matmul %1, %2, %cst {dimension_numbers = #tpu.dot_dimension_numbers<[1], [0], [0], [1], [0, 0, 1, 1], [], []>} : vector<64x256xbf16>, vector<256x128xbf16>, vector<64x128xf32> -> vector<64x128xf32>
    %c0_4 = arith.constant 0 : index
    %c0_5 = arith.constant 0 : index
    %4 = vector.load %arg3[%c0_4, %c0_5] : memref<1x128xf32, #tpu.memory_space<vmem>>, vector<1x128xf32>
    %5 = vector.broadcast %4 : vector<1x128xf32> to vector<64x128xf32>
    %6 = arith.addf %3, %5 : vector<64x128xf32>
    %cst_6 = arith.constant 0.000000e+00 : f32
    %7 = vector.broadcast %cst_6 : f32 to vector<64x128xf32>
    %8 = arith.maximumf %6, %7 : vector<64x128xf32>
    %9 = arith.truncf %8 : vector<64x128xf32> to vector<64x128xbf16>
    %c1 = arith.constant 1 : index
    %c0_7 = arith.constant 0 : index
    %c0_8 = arith.constant 0 : index
    %10 = vector.load %arg1[%c1, %c0_7, %c0_8] : memref<5x64x256xbf16, #tpu.memory_space<vmem>>, vector<1x64x256xbf16>
    %11 = vector.shape_cast %10 : vector<1x64x256xbf16> to vector<64x256xbf16>
    %c0_9 = arith.constant 0 : index
    %c0_10 = arith.constant 0 : index
    %12 = vector.load %arg2[%c0_9, %c0_10] : memref<256x128xbf16, #tpu.memory_space<vmem>>, vector<256x128xbf16>
    %cst_11 = arith.constant dense<0.000000e+00> : vector<64x128xf32>
    %13 = tpu.matmul %11, %12, %cst_11 {dimension_numbers = #tpu.dot_dimension_numbers<[1], [0], [0], [1], [0, 0, 1, 1], [], []>} : vector<64x256xbf16>, vector<256x128xbf16>, vector<64x128xf32> -> vector<64x128xf32>
    %c0_12 = arith.constant 0 : index
    %c0_13 = arith.constant 0 : index
    %14 = vector.load %arg3[%c0_12, %c0_13] : memref<1x128xf32, #tpu.memory_space<vmem>>, vector<1x128xf32>
    %15 = vector.broadcast %14 : vector<1x128xf32> to vector<64x128xf32>
    %16 = arith.addf %13, %15 : vector<64x128xf32>
    %cst_14 = arith.constant 0.000000e+00 : f32
    %17 = vector.broadcast %cst_14 : f32 to vector<64x128xf32>
    %18 = arith.maximumf %16, %17 : vector<64x128xf32>
    %19 = arith.truncf %18 : vector<64x128xf32> to vector<64x128xbf16>
    %c2 = arith.constant 2 : index
    %c0_15 = arith.constant 0 : index
    %c0_16 = arith.constant 0 : index
    %20 = vector.load %arg1[%c2, %c0_15, %c0_16] : memref<5x64x256xbf16, #tpu.memory_space<vmem>>, vector<1x64x256xbf16>
    %21 = vector.shape_cast %20 : vector<1x64x256xbf16> to vector<64x256xbf16>
    %c0_17 = arith.constant 0 : index
    %c0_18 = arith.constant 0 : index
    %22 = vector.load %arg2[%c0_17, %c0_18] : memref<256x128xbf16, #tpu.memory_space<vmem>>, vector<256x128xbf16>
    %cst_19 = arith.constant dense<0.000000e+00> : vector<64x128xf32>
    %23 = tpu.matmul %21, %22, %cst_19 {dimension_numbers = #tpu.dot_dimension_numbers<[1], [0], [0], [1], [0, 0, 1, 1], [], []>} : vector<64x256xbf16>, vector<256x128xbf16>, vector<64x128xf32> -> vector<64x128xf32>
    %c0_20 = arith.constant 0 : index
    %c0_21 = arith.constant 0 : index
    %24 = vector.load %arg3[%c0_20, %c0_21] : memref<1x128xf32, #tpu.memory_space<vmem>>, vector<1x128xf32>
    %25 = vector.broadcast %24 : vector<1x128xf32> to vector<64x128xf32>
    %26 = arith.addf %23, %25 : vector<64x128xf32>
    %cst_22 = arith.constant 0.000000e+00 : f32
    %27 = vector.broadcast %cst_22 : f32 to vector<64x128xf32>
    %28 = arith.maximumf %26, %27 : vector<64x128xf32>
    %29 = arith.truncf %28 : vector<64x128xf32> to vector<64x128xbf16>
    %c3 = arith.constant 3 : index
    %c0_23 = arith.constant 0 : index
    %c0_24 = arith.constant 0 : index
    %30 = vector.load %arg1[%c3, %c0_23, %c0_24] : memref<5x64x256xbf16, #tpu.memory_space<vmem>>, vector<1x64x256xbf16>
    %31 = vector.shape_cast %30 : vector<1x64x256xbf16> to vector<64x256xbf16>
    %c0_25 = arith.constant 0 : index
    %c0_26 = arith.constant 0 : index
    %32 = vector.load %arg2[%c0_25, %c0_26] : memref<256x128xbf16, #tpu.memory_space<vmem>>, vector<256x128xbf16>
    %cst_27 = arith.constant dense<0.000000e+00> : vector<64x128xf32>
    %33 = tpu.matmul %31, %32, %cst_27 {dimension_numbers = #tpu.dot_dimension_numbers<[1], [0], [0], [1], [0, 0, 1, 1], [], []>} : vector<64x256xbf16>, vector<256x128xbf16>, vector<64x128xf32> -> vector<64x128xf32>
    %c0_28 = arith.constant 0 : index
    %c0_29 = arith.constant 0 : index
    %34 = vector.load %arg3[%c0_28, %c0_29] : memref<1x128xf32, #tpu.memory_space<vmem>>, vector<1x128xf32>
    %35 = vector.broadcast %34 : vector<1x128xf32> to vector<64x128xf32>
    %36 = arith.addf %33, %35 : vector<64x128xf32>
    %cst_30 = arith.constant 0.000000e+00 : f32
    %37 = vector.broadcast %cst_30 : f32 to vector<64x128xf32>
    %38 = arith.maximumf %36, %37 : vector<64x128xf32>
    %39 = arith.truncf %38 : vector<64x128xf32> to vector<64x128xbf16>
    %c4 = arith.constant 4 : index
    %c0_31 = arith.constant 0 : index
    %c0_32 = arith.constant 0 : index
    %40 = vector.load %arg1[%c4, %c0_31, %c0_32] : memref<5x64x256xbf16, #tpu.memory_space<vmem>>, vector<1x64x256xbf16>
    %41 = vector.shape_cast %40 : vector<1x64x256xbf16> to vector<64x256xbf16>
    %c0_33 = arith.constant 0 : index
    %c0_34 = arith.constant 0 : index
    %42 = vector.load %arg2[%c0_33, %c0_34] : memref<256x128xbf16, #tpu.memory_space<vmem>>, vector<256x128xbf16>
    %cst_35 = arith.constant dense<0.000000e+00> : vector<64x128xf32>
    %43 = tpu.matmul %41, %42, %cst_35 {dimension_numbers = #tpu.dot_dimension_numbers<[1], [0], [0], [1], [0, 0, 1, 1], [], []>} : vector<64x256xbf16>, vector<256x128xbf16>, vector<64x128xf32> -> vector<64x128xf32>
    %c0_36 = arith.constant 0 : index
    %c0_37 = arith.constant 0 : index
    %44 = vector.load %arg3[%c0_36, %c0_37] : memref<1x128xf32, #tpu.memory_space<vmem>>, vector<1x128xf32>
    %45 = vector.broadcast %44 : vector<1x128xf32> to vector<64x128xf32>
    %46 = arith.addf %43, %45 : vector<64x128xf32>
    %cst_38 = arith.constant 0.000000e+00 : f32
    %47 = vector.broadcast %cst_38 : f32 to vector<64x128xf32>
    %48 = arith.maximumf %46, %47 : vector<64x128xf32>
    %49 = arith.truncf %48 : vector<64x128xf32> to vector<64x128xbf16>
    %50 = tpu.concatenate %9, %19, %29, %39, %49 in 1 : vector<64x128xbf16>, vector<64x128xbf16>, vector<64x128xbf16>, vector<64x128xbf16>, vector<64x128xbf16> -> vector<64x640xbf16>
    %c0_39 = arith.constant 0 : index
    %c0_40 = arith.constant 0 : index
    %51 = vector.load %arg4[%c0_39, %c0_40] : memref<640x128xbf16, #tpu.memory_space<vmem>>, vector<640x128xbf16>
    %cst_41 = arith.constant dense<0.000000e+00> : vector<64x128xf32>
    %52 = tpu.matmul %50, %51, %cst_41 {dimension_numbers = #tpu.dot_dimension_numbers<[1], [0], [0], [1], [0, 0, 1, 1], [], []>} : vector<64x640xbf16>, vector<640x128xbf16>, vector<64x128xf32> -> vector<64x128xf32>
    %c0_42 = arith.constant 0 : index
    %c0_43 = arith.constant 0 : index
    %53 = vector.load %arg5[%c0_42, %c0_43] : memref<1x128xf32, #tpu.memory_space<vmem>>, vector<1x128xf32>
    %54 = vector.broadcast %53 : vector<1x128xf32> to vector<64x128xf32>
    %55 = arith.addf %52, %54 : vector<64x128xf32>
    %cst_44 = arith.constant 0.000000e+00 : f32
    %56 = vector.broadcast %cst_44 : f32 to vector<64x128xf32>
    %57 = arith.maximumf %55, %56 : vector<64x128xf32>
    %cst_45 = arith.constant dense<0.000000e+00> : vector<128xf32>
    %58 = vector.multi_reduction <add>, %57, %cst_45 [0] : vector<64x128xf32> to vector<128xf32>
    %59 = vector.shape_cast %58 : vector<128xf32> to vector<1x128xf32>
    %cst_46 = arith.constant 1.562500e-02 : f32
    %60 = vector.broadcast %cst_46 : f32 to vector<1x128xf32>
    %61 = arith.mulf %59, %60 : vector<1x128xf32>
    %c0_47 = arith.constant 0 : index
    %c0_48 = arith.constant 0 : index
    %62 = vector.load %arg11[%c0_47, %c0_48] : memref<1x128xf32, #tpu.memory_space<vmem>>, vector<1x128xf32>
    tpu.vector_store %arg11[%c0_47, %c0_48], %61 {strides = array<i32>} : memref<1x128xf32, #tpu.memory_space<vmem>>, vector<1x128xf32>,
    %c0_49 = arith.constant 0 : index
    %c0_50 = arith.constant 0 : index
    %63 = vector.load %arg11[%c0_49, %c0_50] : memref<1x128xf32, #tpu.memory_space<vmem>>, vector<1x128xf32>
    %64 = arith.truncf %63 : vector<1x128xf32> to vector<1x128xbf16>
    %c0_51 = arith.constant 0 : index
    %c0_52 = arith.constant 0 : index
    %65 = vector.load %arg6[%c0_51, %c0_52] : memref<128x128xbf16, #tpu.memory_space<vmem>>, vector<128x128xbf16>
    %cst_53 = arith.constant dense<0.000000e+00> : vector<1x128xf32>
    %66 = tpu.matmul %64, %65, %cst_53 {dimension_numbers = #tpu.dot_dimension_numbers<[1], [0], [0], [1], [0, 0, 1, 1], [], []>} : vector<1x128xbf16>, vector<128x128xbf16>, vector<1x128xf32> -> vector<1x128xf32>
    %c0_54 = arith.constant 0 : index
    %c0_55 = arith.constant 0 : index
    %67 = vector.load %arg7[%c0_54, %c0_55] : memref<1x128xf32, #tpu.memory_space<vmem>>, vector<1x128xf32>
    %68 = arith.addf %66, %67 : vector<1x128xf32>
    %cst_56 = arith.constant 0.000000e+00 : f32
    %69 = vector.broadcast %cst_56 : f32 to vector<1x128xf32>
    %70 = arith.maximumf %68, %69 : vector<1x128xf32>
    %71 = arith.truncf %70 : vector<1x128xf32> to vector<1x128xbf16>
    %c0_57 = arith.constant 0 : index
    %c0_58 = arith.constant 0 : index
    %72 = vector.load %arg8[%c0_57, %c0_58] : memref<128x128xbf16, #tpu.memory_space<vmem>>, vector<128x128xbf16>
    %cst_59 = arith.constant dense<0.000000e+00> : vector<1x128xf32>
    %73 = tpu.matmul %71, %72, %cst_59 {dimension_numbers = #tpu.dot_dimension_numbers<[1], [0], [0], [1], [0, 0, 1, 1], [], []>} : vector<1x128xbf16>, vector<128x128xbf16>, vector<1x128xf32> -> vector<1x128xf32>
    %c0_60 = arith.constant 0 : index
    %c0_61 = arith.constant 0 : index
    %74 = vector.load %arg9[%c0_60, %c0_61] : memref<1x128xf32, #tpu.memory_space<vmem>>, vector<1x128xf32>
    %75 = arith.addf %73, %74 : vector<1x128xf32>
    %c0_62 = arith.constant 0 : index
    %c0_63 = arith.constant 0 : index
    %c0_64 = arith.constant 0 : index
    %76 = vector.load %arg10[%c0_62, %c0_63, %c0_64] : memref<1x1x128xf32, #tpu.memory_space<vmem>>, vector<1x1x128xf32>
    %77 = vector.shape_cast %76 : vector<1x1x128xf32> to vector<1x128xf32>
    %78 = vector.shape_cast %75 : vector<1x128xf32> to vector<1x1x128xf32>
    tpu.vector_store %arg10[%c0_62, %c0_63, %c0_64], %78 {strides = array<i32>} : memref<1x1x128xf32, #tpu.memory_space<vmem>>, vector<1x1x128xf32>,
    return
  }
  func.func @transform_0(%arg0: i32) -> (i32, i32, i32) {
    %c0_i32 = arith.constant 0 : i32
    %c0_i32_0 = arith.constant 0 : i32
    %c0_i32_1 = arith.constant 0 : i32
    return %c0_i32, %arg0, %c0_i32_0 : i32, i32, i32
  }
  func.func @transform_1(%arg0: i32) -> (i32, i32) {
    %c0_i32 = arith.constant 0 : i32
    %c0_i32_0 = arith.constant 0 : i32
    %c0_i32_1 = arith.constant 0 : i32
    return %c0_i32, %c0_i32_0 : i32, i32
  }
  func.func @transform_2(%arg0: i32) -> (i32, i32) {
    %c0_i32 = arith.constant 0 : i32
    %c0_i32_0 = arith.constant 0 : i32
    %c0_i32_1 = arith.constant 0 : i32
    return %c0_i32, %c0_i32_0 : i32, i32
  }
  func.func @transform_3(%arg0: i32) -> (i32, i32) {
    %c0_i32 = arith.constant 0 : i32
    %c0_i32_0 = arith.constant 0 : i32
    %c0_i32_1 = arith.constant 0 : i32
    return %c0_i32, %c0_i32_0 : i32, i32
  }
  func.func @transform_4(%arg0: i32) -> (i32, i32) {
    %c0_i32 = arith.constant 0 : i32
    %c0_i32_0 = arith.constant 0 : i32
    %c0_i32_1 = arith.constant 0 : i32
    return %c0_i32, %c0_i32_0 : i32, i32
  }
  func.func @transform_5(%arg0: i32) -> (i32, i32) {
    %c0_i32 = arith.constant 0 : i32
    %c0_i32_0 = arith.constant 0 : i32
    %c0_i32_1 = arith.constant 0 : i32
    return %c0_i32, %c0_i32_0 : i32, i32
  }
  func.func @transform_6(%arg0: i32) -> (i32, i32) {
    %c0_i32 = arith.constant 0 : i32
    %c0_i32_0 = arith.constant 0 : i32
    %c0_i32_1 = arith.constant 0 : i32
    return %c0_i32, %c0_i32_0 : i32, i32
  }
  func.func @transform_7(%arg0: i32) -> (i32, i32) {
    %c0_i32 = arith.constant 0 : i32
    %c0_i32_0 = arith.constant 0 : i32
    %c0_i32_1 = arith.constant 0 : i32
    return %c0_i32, %c0_i32_0 : i32, i32
  }
  func.func @transform_8(%arg0: i32) -> (i32, i32) {
    %c0_i32 = arith.constant 0 : i32
    %c0_i32_0 = arith.constant 0 : i32
    %c0_i32_1 = arith.constant 0 : i32
    return %c0_i32, %c0_i32_0 : i32, i32
  }
  func.func @transform_9(%arg0: i32) -> (i32, i32, i32) {
    %c0_i32 = arith.constant 0 : i32
    %c0_i32_0 = arith.constant 0 : i32
    %c0_i32_1 = arith.constant 0 : i32
    return %arg0, %c0_i32, %c0_i32_0 : i32, i32, i32
  }
}

</mosaic_0001>

<bundles_post_ra>
// kernel: tile.9
= control target key start
LH: loop header
LB: loop body
LE: loop exit
PB: predicated region body
PF: predicated region fallthrough
CT: control target
= control target key end

     0   :  { %s43_s10 = smov 80   ;;  %s44_s11 = smov 40   ;;  %vm3_vm0 = vcmask 162816   ;;  %vm9_vm1 = vcmask 818816   ;;  %vm15_vm2 = vcmask 654816   ;;  %vm21_vm3 = vcmask 490816   ;;  %s75_s0 = inlined_call_operand.vmem [shape: f32[5,20], index: 0, kind: input, shape index: {}]   ;;  %s76_s1 = inlined_call_operand.vmem [shape: f32[100], index: 1, kind: output, shape index: {}]  }
   0x1   :  { %v35_v0 = vld [vmem:[%s75_s0 + $0x4] sm:$0x1]   ;;  %v37_v1 = vld [vmem:[%s75_s0 + $0x2] sm:$0x1]   ;;  %v36_v2 = vld [vmem:[%s75_s0 + $0x3] sm:$0x1]  }
   0x2   :  { %7 = vrot.lane.b32.xlu0 %v35_v0, %s43_s10  ;;  %19 = vrot.lane.b32.xlu1 %v37_v1, %s44_s11  ;;  %v38_v3 = vld [vmem:[%s75_s0 + $0x1] sm:$0x1]   ;;  %v2_v4 = vld [vmem:[%s75_s0] sm:$0x1]   ;;  %s45_s0 = smov 60   ;;  %s46_s18 = smov 20  }
   0x3   :  { %4 = vst.msk [vmem:[#allocation0] sm:$0x1] %vm3_vm0, %v2_v4   ;;  %vm27_vm4 = vcmask 326816  }
   0x6   :  { %13 = vrot.lane.b32.xlu0 %v36_v2, %s45_s0  ;;  %25 = vrot.lane.b32.xlu1 %v38_v3, %s46_s18 }
  0x74   :  { %v8_v5 = vpop.permute.xlu0 %7   ;;  %v20_v6 = vpop.permute.xlu1 %19  }
  0x75   :  { %10 = vst.msk [vmem:[#allocation0] sm:$0x1] %vm9_vm1, %v8_v5  }
  0x78   :  { %v14_v7 = vpop.permute.xlu0 %13   ;;  %v26_v8 = vpop.permute.xlu1 %25  }
  0x79   :  { %16 = vst.msk [vmem:[#allocation0] sm:$0x1] %vm15_vm2, %v14_v7  }
  0x7a   :  { %22 = vst.msk [vmem:[#allocation0] sm:$0x1] %vm21_vm3, %v20_v6  }
  0x7b   :  { %28 = vst.msk [vmem:[#allocation0] sm:$0x1] %vm27_vm4, %v26_v8  }
  0x82   :  { %v32_v9 = vld [vmem:[#allocation0] sm:$0x1] }
  0x83   :  { %34 = vst [vmem:[%s76_s1] sm:$0x1] %v32_v9 }

// kernel: tile.8
= control target key start
LH: loop header
LB: loop body
LE: loop exit
PB: predicated region body
PF: predicated region fallthrough
CT: control target
= control target key end

     0   :  { %2 = vsyncpa [#allocation1], 0  ;;  %s44_s6 = smov [#allocation0]   ;;  %s70_s0 = inlined_call_operand.hbm [shape: f32[20], index: 0, kind: input, shape index: {}]   ;;  %s71_s1 = inlined_call_operand.vmem [shape: f32[5,20], index: 1, kind: output, shape index: {}]  }
   0x1   :  { %s9_s7 = sshll.u32 %s44_s6, 4  ;;  %s20_s10 = scalar_lea.hbm %s70_s0, 16  ;;  %s10_s7 = int_to_ptr.vmem [resolvable:$true] %s9_s7 }
   0x2   :  { %p21_p0 = scmp.ne.s32.totalorder %s70_s0, %s20_s10  ;;  %p24_p1 = scmp.lt.u32.totalorder %s20_s10, %s70_s0 }
   0x4   :  { %p26_p2 = pnand %p24_p1, %p21_p0 }
   0x6   :  { %29 = shalt.err (!%p26_p2)
}
   0x7   :  { %s30_s15 = scalar_lea.vmem %s10_s7, 16  ;;  %s34_s16 = scalar_lea.vmem %s10_s7, 32 }
   0x8   :  { %p31_p3 = scmp.ne.s32.totalorder %s10_s7, %s30_s15  ;;  %p35_p4 = scmp.lt.s32.totalorder %s10_s7, %s10_s7 }
   0x9   :  { %p36_p5 = scmp.lt.s32.totalorder %s34_s16, %s30_s15 }
   0xb   :  { %p37_p6 = por %p36_p5, %p35_p4 }
   0xd   :  { %p38_p7 = pnand %p37_p6, %p31_p3 }
   0xf   :  { %41 = shalt.err (!%p38_p7)
}
  0x10   :  { %12 = dma.hbm_to_vmem [thread:$0]  %s70_s0, 16, %s10_s7, [#allocation1]  }
  0x11   :  { %42 = dma.done.wait [#allocation1], 16  }
  0x12   :  { %43 = vsyncadd [#allocation1], 4294967280  ;;  %v16_v0 = vld [vmem:[#allocation0] ss:$0 sm:$0xff] }
  0x13   :  { %17 = vst [vmem:[%s71_s1] sm:$0xff] %v16_v0 }
  0x14   :  { %18 = vsyncpa [#allocation1], 1 }

// kernel: squeeze.0
= control target key start
LH: loop header
LB: loop body
LE: loop exit
PB: predicated region body
PF: predicated region fallthrough
CT: control target
= control target key end

     0   :  { %vm242_vm0 = vcmask 408576   ;;  %v525_v41 = vmov 0.0   ;;  %s596_s0 = inlined_call_operand.vmem [shape: bf16[1,5,20,50], index: 0, kind: input, shape index: {}]   ;;  %s597_s1 = inlined_call_operand.vmem [shape: bf16[100,50], index: 1, kind: output, shape index: {}]  }
   0x1   :  { %v429_v0 = vld [vmem:[%s596_s0 + $0x38] sm:$0xf]  ;;  %v513_v1 = vld [vmem:[%s596_s0 + $0x30] sm:$0xff]   ;;  %v514_v2 = vld [vmem:[%s596_s0 + $0x28] sm:$0xff]  }
   0x2   :  { %v17_v3 = vunpack.c.l.bf16 %v429_v0  ;;  %v457_v4 = vunpack.c.l.bf16 %v513_v1  ;;  %v458_v5 = vunpack.c.h.bf16 %v513_v1  ;;  %v461_v6 = vunpack.c.l.bf16 %v514_v2  ;;  %v515_v7 = vld [vmem:[%s596_s0 + $0x20] sm:$0xff]   ;;  %v516_v8 = vld [vmem:[%s596_s0 + $0x18] sm:$0xff]   ;;  %v517_v9 = vld [vmem:[%s596_s0 + $0x10] sm:$0xff]  }
   0x3   :  { %v462_v10 = vunpack.c.h.bf16 %v514_v2  ;;  %v465_v11 = vunpack.c.l.bf16 %v515_v7  ;;  %v466_v12 = vunpack.c.h.bf16 %v515_v7  ;;  %v469_v13 = vunpack.c.l.bf16 %v516_v8  ;;  %v518_v14 = vld [vmem:[%s596_s0 + $0x8] sm:$0xff]   ;;  %v480_v15 = vld [vmem:[%s596_s0] sm:$0xff]  }
   0x4   :  { %20 = vst [vmem:[#allocation1 + $0x70] sm:$0xff] %v17_v3  ;;  %v470_v16 = vunpack.c.h.bf16 %v516_v8  ;;  %v473_v17 = vunpack.c.l.bf16 %v517_v9  ;;  %v474_v18 = vunpack.c.h.bf16 %v517_v9  ;;  %v477_v19 = vunpack.c.l.bf16 %v518_v14  ;;  %293 = vst.msk [vmem:[#allocation0 + $0x44] sm:$0xff] %vm242_vm0, %v461_v6  }
   0x5   :  { %303 = vst.msk [vmem:[#allocation0 + $0x50] sm:$0xff] %vm242_vm0, %v457_v4   ;;  %308 = vst.msk [vmem:[#allocation0 + $0x58] sm:$0xff] %vm242_vm0, %v458_v5   ;;  %v478_v20 = vunpack.c.h.bf16 %v518_v14  ;;  %v481_v21 = vunpack.c.l.bf16 %v480_v15  ;;  %v482_v22 = vunpack.c.h.bf16 %v480_v15 }
   0x6   :  { %68 = vst [vmem:[#allocation1 + $0x58] sm:$0xff] %v462_v10  ;;  %116 = vst [vmem:[#allocation1 + $0x40] sm:$0xff] %v465_v11 }
   0x7   :  { %273 = vst.msk [vmem:[#allocation0 + $0x28] sm:$0xff] %vm242_vm0, %v469_v13   ;;  %288 = vst.msk [vmem:[#allocation0 + $0x3c] sm:$0xff] %vm242_vm0, %v466_v12  }
   0x8   :  { %164 = vst [vmem:[#allocation1 + $0x28] sm:$0xff] %v474_v18  ;;  %212 = vst [vmem:[#allocation1 + $0x10] sm:$0xff] %v477_v19 }
   0x9   :  { %263 = vst.msk [vmem:[#allocation0 + $0x1c] sm:$0xff] %vm242_vm0, %v473_v17   ;;  %278 = vst.msk [vmem:[#allocation0 + $0x30] sm:$0xff] %vm242_vm0, %v470_v16  }
   0xa   :  { %243 = vst.msk [vmem:[#allocation0] sm:$0xff] %vm242_vm0, %v481_v21   ;;  %248 = vst.msk [vmem:[#allocation0 + $0x8] sm:$0xff] %vm242_vm0, %v482_v22  }
   0xb   :  { %258 = vst.msk [vmem:[#allocation0 + $0x14] sm:$0xff] %vm242_vm0, %v478_v20   ;;  %v310_v23 = vld [vmem:[#allocation1 + $0x70] sm:$0xf]  }
   0xc   :  { %v385_v24 = vld [vmem:[#allocation0 + $0x50] sm:$0xff]  ;;  %v392_v25 = vld [vmem:[#allocation0 + $0x58] sm:$0xff]  ;;  %313 = vst.msk [vmem:[#allocation0 + $0x60] sm:$0xf] %vm242_vm0, %v310_v23  }
   0xd   :  { %v280_v26 = vld [vmem:[#allocation1 + $0x40] sm:$0xf]   ;;  %v295_v27 = vld [vmem:[#allocation1 + $0x58] sm:$0xf]   ;;  %v511_v28 = vpack.c.bf16 %v392_v25, %v385_v24 }
   0xe   :  { %283 = vst.msk [vmem:[#allocation0 + $0x38] sm:$0xf] %vm242_vm0, %v280_v26   ;;  %298 = vst.msk [vmem:[#allocation0 + $0x4c] sm:$0xf] %vm242_vm0, %v295_v27   ;;  %v371_v35 = vld [vmem:[#allocation0 + $0x40] sm:$0xff]  ;;  %v350_v37 = vld [vmem:[#allocation0 + $0x28] sm:$0xff] }
   0xf   :  { %v250_v29 = vld [vmem:[#allocation1 + $0x10] sm:$0xf]   ;;  %v265_v30 = vld [vmem:[#allocation1 + $0x28] sm:$0xf]   ;;  %523 = vst [vmem:[%s597_s1 + $0x28] sm:$0xff] %v511_v28  }
  0x10   :  { %253 = vst.msk [vmem:[#allocation0 + $0x10] sm:$0xf] %vm242_vm0, %v250_v29   ;;  %268 = vst.msk [vmem:[#allocation0 + $0x24] sm:$0xf] %vm242_vm0, %v265_v30   ;;  %v357_v34 = vld [vmem:[#allocation0 + $0x30] sm:$0xff] }
  0x11   :  { %v318_v31 = vld [vmem:[#allocation0] sm:$0xff]  ;;  %v323_v32 = vld [vmem:[#allocation0 + $0x8] sm:$0xff] }
  0x12   :  { %v486_v33 = vpack.c.bf16 %v323_v32, %v318_v31  ;;  %v336_v36 = vld [vmem:[#allocation0 + $0x18] sm:$0xff] }
  0x13   :  { %v399_v38 = vld [vmem:[#allocation0 + $0x60] sm:$0xff] }
  0x14   :  { %487 = vst [vmem:[%s597_s1] sm:$0xff] %v486_v33   ;;  %v400_v42 = vpack.c.bf16 %v525_v41, %v399_v38 }
  0x15   :  { %v364_v39 = vld [vmem:[#allocation0 + $0x38] sm:$0xff]  ;;  %v378_v40 = vld [vmem:[#allocation0 + $0x48] sm:$0xff] }
  0x16   :  { %v501_v45 = vpack.c.bf16 %v364_v39, %v357_v34  ;;  %v506_v46 = vpack.c.bf16 %v378_v40, %v371_v35  ;;  %454 = vst [vmem:[%s597_s1 + $0x30] sm:$0xf] %v400_v42 }
  0x17   :  { %v329_v43 = vld [vmem:[#allocation0 + $0x10] sm:$0xff]  ;;  %v343_v44 = vld [vmem:[#allocation0 + $0x20] sm:$0xff] }
  0x18   :  { %v491_v47 = vpack.c.bf16 %v336_v36, %v329_v43  ;;  %v496_v48 = vpack.c.bf16 %v350_v37, %v343_v44  ;;  %521 = vst [vmem:[%s597_s1 + $0x18] sm:$0xff] %v501_v45   ;;  %522 = vst [vmem:[%s597_s1 + $0x20] sm:$0xff] %v506_v46  }
  0x1a   :  { %519 = vst [vmem:[%s597_s1 + $0x8] sm:$0xff] %v491_v47   ;;  %520 = vst [vmem:[%s597_s1 + $0x10] sm:$0xff] %v496_v48  }

// kernel: lenet_forward.1
= control target key start
LH: loop header
LB: loop body
LE: loop exit
PB: predicated region body
PF: predicated region fallthrough
CT: control target
= control target key end

     0   :  { %14 = vsyncpa [#allocation5], 0  ;;  %s3582_s0 = inlined_call_operand.vmem [shape: bf16[5,128,256], index: 0, kind: input, shape index: {}]   ;;  %s3583_s1 = inlined_call_operand.vmem [shape: bf16[256,128], index: 1, kind: input, shape index: {}]   ;;  %s3584_s2 = inlined_call_operand.vmem [shape: f32[1,128], index: 2, kind: input, shape index: {}]   ;;  %s3585_s3 = inlined_call_operand.vmem [shape: bf16[640,128], index: 3, kind: input, shape index: {}]   ;;  %s3586_s4 = inlined_call_operand.vmem [shape: f32[1,128], index: 4, kind: input, shape index: {}]   ;;  %s3587_s5 = inlined_call_operand.vmem [shape: bf16[128,128], index: 5, kind: input, shape index: {}]   ;;  %s3588_s6 = inlined_call_operand.vmem [shape: f32[1,128], index: 6, kind: input, shape index: {}]   ;;  %s3589_s7 = inlined_call_operand.vmem [shape: bf16[128,128], index: 7, kind: input, shape index: {}]   ;;  %s3590_s8 = inlined_call_operand.vmem [shape: f32[1,128], index: 8, kind: input, shape index: {}]   ;;  %s3591_s9 = inlined_call_operand.hbm [shape: f32[2,1,128], index: 9, kind: output, shape index: {}]  }
   0x1   :  { %16 = vsyncpa [#allocation5 + $0x1], 0  ;;  %s2946_s30 = smov 0   ;;  %s2948_s10 = smov 0  }
   0x2   :  { %s2950_s11 = smov 0   ;;  %s2952_s12 = smov 0  }
   0x3 LB: > { %s2121_s13 = sadd.s32 4294967295, %s2891_s12   ;;  %s2122_s14 = sadd.s32 4294967294, %s2891_s12   ;;  %s2891_s12 = sphi %s2952_s12, %s3597_s12   ;;  %s2887_s11 = sphi %s2950_s11, %s3596_s11   ;;  %s2883_s10 = sphi %s2948_s10, %s3595_s10   ;;  %s2879_s30 = sphi %s2946_s30, %s3594_s30  }
   0x4   : > { %s2969_s15 = sadd.s32 1, %s2891_s12   ;;  %s29_s16 = sadd.s32 1, %s2887_s11 }
   0x5   : > { %s26_s17 = ssub.s32 %s2891_s12, %s2969_s15  ;;  %p36_p0 = scmp.ne.s32.totalorder %s2887_s11, %s2883_s10 }
   0x6   : > { %p27_p1 = scmp.eq.s32.totalorder %s26_s17, 0  ;;  %p37_p2 = scmp.eq.s32.totalorder %s2891_s12, 0 }
   0x7   : > { %p234_p3 = scmp.eq.s32.totalorder %s2121_s13, 1  ;;  %p239_p4 = scmp.ne.s32.totalorder %s2883_s10, %s2879_s30 }
   0x8   : > { %s2982_s18 = scalar_select %p27_p1, %s2887_s11, %s29_s16  }
   0x9   : > { %p38_p5 = por %p37_p2, %p36_p0  ;;  %p2984_p6 = por %p234_p3, %p36_p0 }
   0xa   : > { %p240_p7 = scmp.eq.s32.totalorder %s2122_s14, 1  ;;  %p2124_p9 = scmp.ge.s32.totalorder %s2891_s12, 2 }
   0xc   : > { %p2988_p8 = por %p240_p7, %p239_p4  ;;  %280 = sbr.rel (%p2124_p9) target bundleno = 44 (0x2c), region = 48 }
  0x13   : > { %283 = sbr.rel (!%p38_p5) target bundleno = 44 (0x2c), region = 52  ;;  %s285_s21 = sand.u32 (%p38_p5), 1, %s2887_s11  }
  0x14   : > { %s2279_s22 = sshll.u32 (%p38_p5), %s2891_s12, 6  ;;  %s2654_s23 = smul.u32 (%p38_p5), 320, %s285_s21 }
  0x15   : > { %s3000_s26 = scalar_lea.vmem (%p38_p5), %s3582_s0, %s2279_s22 }
  0x16   : > { %v397_v0 = vld [vmem:[%s3000_s26] sm:$0xff] (%p38_p5)  ;;  %v399_v1 = vld [vmem:[%s3000_s26 + $0x8] sm:$0xff] (%p38_p5)  ;;  %v401_v2 = vld [vmem:[%s3000_s26 + $0x10] sm:$0xff] (%p38_p5)  ;;  %s3008_s27 = scalar_lea.vmem (%p38_p5), [#allocation3], %s2654_s23 }
  0x17   : > { %v403_v3 = vld [vmem:[%s3000_s26 + $0x18] sm:$0xff] (%p38_p5)  ;;  %v405_v4 = vld [vmem:[%s3000_s26 + $0x20] sm:$0xff] (%p38_p5)  ;;  %v407_v5 = vld [vmem:[%s3000_s26 + $0x28] sm:$0xff] (%p38_p5)  ;;  %398 = vst [vmem:[%s3008_s27] sm:$0xff] (%p38_p5), %v397_v0 }
  0x18   : > { %400 = vst [vmem:[%s3008_s27 + $0x8] sm:$0xff] (%p38_p5), %v399_v1  ;;  %402 = vst [vmem:[%s3008_s27 + $0x10] sm:$0xff] (%p38_p5), %v401_v2  ;;  %v409_v6 = vld [vmem:[%s3000_s26 + $0x30] sm:$0xff] (%p38_p5)  ;;  %v411_v7 = vld [vmem:[%s3000_s26 + $0x38] sm:$0xff] (%p38_p5) }
  0x19   : > { %404 = vst [vmem:[%s3008_s27 + $0x18] sm:$0xff] (%p38_p5), %v403_v3  ;;  %406 = vst [vmem:[%s3008_s27 + $0x20] sm:$0xff] (%p38_p5), %v405_v4  ;;  %v413_v8 = vld [vmem:[%s3000_s26 + $0x80] sm:$0xff] (%p38_p5)  ;;  %v415_v9 = vld [vmem:[%s3000_s26 + $0x88] sm:$0xff] (%p38_p5) }
  0x1a   : > { %408 = vst [vmem:[%s3008_s27 + $0x28] sm:$0xff] %v407_v5  ;;  %410 = vst [vmem:[%s3008_s27 + $0x30] sm:$0xff] %v409_v6  ;;  %v417_v10 = vld [vmem:[%s3000_s26 + $0x90] sm:$0xff]  ;;  %v419_v11 = vld [vmem:[%s3000_s26 + $0x98] sm:$0xff] }
  0x1b   : > { %412 = vst [vmem:[%s3008_s27 + $0x38] sm:$0xff] %v411_v7  ;;  %414 = vst [vmem:[%s3008_s27 + $0x40] sm:$0xff] %v413_v8  ;;  %v421_v12 = vld [vmem:[%s3000_s26 + $0xa0] sm:$0xff]  ;;  %v423_v13 = vld [vmem:[%s3000_s26 + $0xa8] sm:$0xff] }
  0x1c   : > { %416 = vst [vmem:[%s3008_s27 + $0x48] sm:$0xff] %v415_v9  ;;  %418 = vst [vmem:[%s3008_s27 + $0x50] sm:$0xff] %v417_v10  ;;  %v425_v14 = vld [vmem:[%s3000_s26 + $0xb0] sm:$0xff]  ;;  %v427_v15 = vld [vmem:[%s3000_s26 + $0xb8] sm:$0xff] }
  0x1d   : > { %420 = vst [vmem:[%s3008_s27 + $0x58] sm:$0xff] %v419_v11  ;;  %422 = vst [vmem:[%s3008_s27 + $0x60] sm:$0xff] %v421_v12  ;;  %v429_v16 = vld [vmem:[%s3000_s26 + $0x100] sm:$0xff]  ;;  %v431_v17 = vld [vmem:[%s3000_s26 + $0x108] sm:$0xff] }
  0x1e   : > { %424 = vst [vmem:[%s3008_s27 + $0x68] sm:$0xff] %v423_v13  ;;  %426 = vst [vmem:[%s3008_s27 + $0x70] sm:$0xff] %v425_v14  ;;  %v433_v18 = vld [vmem:[%s3000_s26 + $0x110] sm:$0xff]  ;;  %v435_v19 = vld [vmem:[%s3000_s26 + $0x118] sm:$0xff] }
  0x1f   : > { %428 = vst [vmem:[%s3008_s27 + $0x78] sm:$0xff] %v427_v15  ;;  %430 = vst [vmem:[%s3008_s27 + $0x80] sm:$0xff] %v429_v16  ;;  %v437_v20 = vld [vmem:[%s3000_s26 + $0x120] sm:$0xff]  ;;  %v439_v21 = vld [vmem:[%s3000_s26 + $0x128] sm:$0xff] }
  0x20   : > { %432 = vst [vmem:[%s3008_s27 + $0x88] sm:$0xff] %v431_v17  ;;  %434 = vst [vmem:[%s3008_s27 + $0x90] sm:$0xff] %v433_v18  ;;  %v441_v22 = vld [vmem:[%s3000_s26 + $0x130] sm:$0xff]  ;;  %v443_v23 = vld [vmem:[%s3000_s26 + $0x138] sm:$0xff] }
  0x21   : > { %436 = vst [vmem:[%s3008_s27 + $0x98] sm:$0xff] %v435_v19  ;;  %438 = vst [vmem:[%s3008_s27 + $0xa0] sm:$0xff] %v437_v20  ;;  %v445_v24 = vld [vmem:[%s3000_s26 + $0x180] sm:$0xff]  ;;  %v447_v25 = vld [vmem:[%s3000_s26 + $0x188] sm:$0xff] }
  0x22   : > { %440 = vst [vmem:[%s3008_s27 + $0xa8] sm:$0xff] %v439_v21  ;;  %442 = vst [vmem:[%s3008_s27 + $0xb0] sm:$0xff] %v441_v22  ;;  %v449_v26 = vld [vmem:[%s3000_s26 + $0x190] sm:$0xff]  ;;  %v451_v27 = vld [vmem:[%s3000_s26 + $0x198] sm:$0xff] }
  0x23   : > { %444 = vst [vmem:[%s3008_s27 + $0xb8] sm:$0xff] %v443_v23  ;;  %446 = vst [vmem:[%s3008_s27 + $0xc0] sm:$0xff] %v445_v24  ;;  %v453_v28 = vld [vmem:[%s3000_s26 + $0x1a0] sm:$0xff]  ;;  %v455_v29 = vld [vmem:[%s3000_s26 + $0x1a8] sm:$0xff] }
  0x24   : > { %448 = vst [vmem:[%s3008_s27 + $0xc8] sm:$0xff] %v447_v25  ;;  %450 = vst [vmem:[%s3008_s27 + $0xd0] sm:$0xff] %v449_v26  ;;  %v457_v30 = vld [vmem:[%s3000_s26 + $0x1b0] sm:$0xff]  ;;  %v459_v31 = vld [vmem:[%s3000_s26 + $0x1b8] sm:$0xff] }
  0x25   : > { %452 = vst [vmem:[%s3008_s27 + $0xd8] sm:$0xff] %v451_v27  ;;  %454 = vst [vmem:[%s3008_s27 + $0xe0] sm:$0xff] %v453_v28  ;;  %v461_v32 = vld [vmem:[%s3000_s26 + $0x200] sm:$0xff]  ;;  %v463_v33 = vld [vmem:[%s3000_s26 + $0x208] sm:$0xff] }
  0x26   : > { %456 = vst [vmem:[%s3008_s27 + $0xe8] sm:$0xff] %v455_v29  ;;  %458 = vst [vmem:[%s3008_s27 + $0xf0] sm:$0xff] %v457_v30  ;;  %v465_v34 = vld [vmem:[%s3000_s26 + $0x210] sm:$0xff]  ;;  %v467_v35 = vld [vmem:[%s3000_s26 + $0x218] sm:$0xff] }
  0x27   : > { %460 = vst [vmem:[%s3008_s27 + $0xf8] sm:$0xff] %v459_v31  ;;  %462 = vst [vmem:[%s3008_s27 + $0x100] sm:$0xff] %v461_v32  ;;  %v469_v36 = vld [vmem:[%s3000_s26 + $0x220] sm:$0xff]  ;;  %v471_v37 = vld [vmem:[%s3000_s26 + $0x228] sm:$0xff] }
  0x28   : > { %464 = vst [vmem:[%s3008_s27 + $0x108] sm:$0xff] %v463_v33  ;;  %466 = vst [vmem:[%s3008_s27 + $0x110] sm:$0xff] %v465_v34  ;;  %v473_v38 = vld [vmem:[%s3000_s26 + $0x230] sm:$0xff]  ;;  %v475_v39 = vld [vmem:[%s3000_s26 + $0x238] sm:$0xff] }
  0x29   : > { %468 = vst [vmem:[%s3008_s27 + $0x118] sm:$0xff] %v467_v35  ;;  %470 = vst [vmem:[%s3008_s27 + $0x120] sm:$0xff] %v469_v36 }
  0x2a   : > { %472 = vst [vmem:[%s3008_s27 + $0x128] sm:$0xff] %v471_v37  ;;  %474 = vst [vmem:[%s3008_s27 + $0x130] sm:$0xff] %v473_v38 }
  0x2b   : > { %476 = vst [vmem:[%s3008_s27 + $0x138] sm:$0xff] %v475_v39 }
  0x2c PF: > { %p2128_p10 = scmp.ge.s32.totalorder %s2891_s12, 1  ;;  %p481_p11 = scmp.lt.s32.totalorder %s2891_s12, 3 }
  0x2e   : > { %p482_p12 = pnand %p2128_p10, %p481_p11 }
  0x2f   : > { %v3089_v40 = vld [vmem:[%s3583_s1 + $0x40] sm:$0xff] (!%p482_p12)   ;;  %v3101_v42 = vld [vmem:[%s3583_s1 + $0x48] sm:$0xff] (!%p482_p12)   ;;  %v3115_v44 = vld [vmem:[%s3583_s1 + $0x50] sm:$0xff] (!%p482_p12)   ;;  %s3125_s28 = sand.u32 (!%p482_p12), 1, %s2883_s10   ;;  %vm2894_vm0 = vmmov (!%p482_p12), 0   ;;  %s2895_s26 = smov (!%p482_p12), [#allocation4]  }
  0x30   : > { %485 = sbr.rel (%p482_p12) target bundleno = 1086 (0x43e), region = 90  ;;  %v3094_v41 = vld [vmem:[%s3583_s1] sm:$0xff] (!%p482_p12)   ;;  %2280 = vmatprep.subr.bf16.mxu0 (!%p482_p12), %v3089_v40  ;;  %2320 = vmatprep.subr.bf16.mxu1 (!%p482_p12), %v3089_v40  ;;  %v3108_v43 = vld [vmem:[%s3583_s1 + $0x8] sm:$0xff] (!%p482_p12)   ;;  %v3122_v45 = vld [vmem:[%s3583_s1 + $0x10] sm:$0xff] (!%p482_p12)   ;;  %s2049_s25 = scalar_lea.sflag (!%p482_p12), [#allocation5], %s3125_s28 }
  0x31   : > { %2281 = vmatpush3.bf16.msra.mxu0 (!%p482_p12), %v3094_v41  ;;  %2321 = vmatpush3.bf16.msra.mxu1 (!%p482_p12), %v3094_v41  ;;  %v3132_v46 = vld [vmem:[%s3583_s1 + $0x58] sm:$0xff] (!%p482_p12)   ;;  %s2655_s16 = smul.u32 (!%p482_p12), 320, %s3125_s28  ;;  %v3147_v48 = vld [vmem:[%s3583_s1 + $0x60] sm:$0xff] (!%p482_p12)   ;;  %v3161_v50 = vld [vmem:[%s3583_s1 + $0x68] sm:$0xff] (!%p482_p12)   ;;  %s2833_s27 = sshll.u32 (!%p482_p12), %s2895_s26, 4  ;;  %s2834_s27 = int_to_ptr.vmem [resolvable:$false] %s2833_s27 }
  0x32   : > { %2282 = vmatprep.subr.bf16.mxu0 (!%p482_p12), %v3101_v42  ;;  %2322 = vmatprep.subr.bf16.mxu1 (!%p482_p12), %v3101_v42  ;;  %v3140_v47 = vld [vmem:[%s3583_s1 + $0x18] sm:$0xff] (!%p482_p12)   ;;  %v3154_v49 = vld [vmem:[%s3583_s1 + $0x20] sm:$0xff] (!%p482_p12)   ;;  %v3172_v53 = vld [vmem:[%s3583_s1 + $0x28] sm:$0xff] (!%p482_p12)   ;;  %s2835_s14 = scalar_lea.vmem (!%p482_p12), %s2834_s27, 32 }
  0x33   : > { %s3163_s29 = scalar_lea.vmem (!%p482_p12), [#allocation3], %s2655_s16  ;;  %v3179_v54 = vld [vmem:[%s3583_s1 + $0x70] sm:$0xff] (!%p482_p12)   ;;  %v3193_v56 = vld [vmem:[%s3583_s1 + $0x78] sm:$0xff] (!%p482_p12)   ;;  %v2773_v10 = vld [vmem:[%s3585_s3 + $0x40] sm:$0xff] (!%p482_p12)   ;;  %s521_s16 = scalar_lea.vmem (!%p482_p12), [#allocation4], %s3125_s28 }
  0x34   : > { %v2715_v51 = vld [vmem:[%s3163_s29 + $0x4] ss:$8 sps:$4 sm:$0xff] (!%p482_p12)   ;;  %v3200_v57 = vld [vmem:[%s3583_s1 + $0x38] sm:$0xff] (!%p482_p12)   ;;  %v2713_v58 = vld [vmem:[%s3163_s29] ss:$8 sps:$4 sm:$0xff] (!%p482_p12)   ;;  %s2061_s21 = sshll.u32 (!%p482_p12), %s521_s16, 4  ;;  %s3540_s21 = int_to_ptr.vmem [resolvable:$true] %s2061_s21 }
  0x35   : > { %2283 = vmatpush3.bf16.msra.mxu0 (!%p482_p12), %v3108_v43  ;;  %2323 = vmatpush3.bf16.msra.mxu1 (!%p482_p12), %v3108_v43  ;;  %v2718_v52 = vld [vmem:[%s3163_s29 + $0x44] ss:$8 sps:$4 sm:$0xff] (!%p482_p12)   ;;  %v2716_v59 = vld [vmem:[%s3163_s29 + $0x40] ss:$8 sps:$4 sm:$0xff] (!%p482_p12)   ;;  %v2719_v60 = vld [vmem:[%s3163_s29 + $0x14] ss:$8 sps:$4 sm:$0xff] (!%p482_p12)   ;;  %p2836_p2 = scmp.lt.s32.totalorder (!%p482_p12), %s3540_s21, %s2834_s27 }
  0x36   : > { %2284 = vmatprep.subr.bf16.mxu0 (!%p482_p12), %v3115_v44  ;;  %2324 = vmatprep.subr.bf16.mxu1 (!%p482_p12), %v3115_v44  ;;  %v3186_v55 = vld [vmem:[%s3583_s1 + $0x30] sm:$0xff] (!%p482_p12)   ;;  %v2729_v2 = vld [vmem:[%s3163_s29 + $0x20] ss:$8 sps:$4 sm:$0xff] (!%p482_p12)   ;;  %v2779_v24 = vld [vmem:[%s3585_s3 + $0x58] sm:$0xff] (!%p482_p12)  }
  0x37   : > { %739 = vmatprep.mubr.bf16.mxu0 %v2715_v51  ;;  %865 = vmatprep.mubr.bf16.mxu1 %v2718_v52  ;;  %v2721_v61 = vld [vmem:[%s3163_s29 + $0x54] ss:$8 sps:$4 sm:$0xff]   ;;  %v2723_v62 = vld [vmem:[%s3163_s29 + $0x10] ss:$8 sps:$4 sm:$0xff]   ;;  %v2725_v0 = vld [vmem:[%s3163_s29 + $0x24] ss:$8 sps:$4 sm:$0xff]  }
  0x38   : > { %v2724_v63 = vld [vmem:[%s3163_s29 + $0x50] ss:$8 sps:$4 sm:$0xff]   ;;  %v2727_v1 = vld [vmem:[%s3163_s29 + $0x64] ss:$8 sps:$4 sm:$0xff]   ;;  %v2730_v3 = vld [vmem:[%s3163_s29 + $0x60] ss:$8 sps:$4 sm:$0xff]  }
  0x39   : > { %2285 = vmatpush3.bf16.msra.mxu0 %v3122_v45  ;;  %2325 = vmatpush3.bf16.msra.mxu1 %v3122_v45  ;;  %v2731_v4 = vld [vmem:[%s3163_s29 + $0x34] ss:$8 sps:$4 sm:$0xff]   ;;  %v2735_v6 = vld [vmem:[%s3163_s29 + $0x30] ss:$8 sps:$4 sm:$0xff]   ;;  %v2739_v8 = vld [vmem:[%s3163_s29 + $0x84] ss:$8 sps:$4 sm:$0xff]  }
  0x3a   : > { %2286 = vmatprep.subr.bf16.mxu0 %v3132_v46  ;;  %2326 = vmatprep.subr.bf16.mxu1 %v3132_v46  ;;  %v2733_v5 = vld [vmem:[%s3163_s29 + $0x74] ss:$8 sps:$4 sm:$0xff]   ;;  %v2736_v7 = vld [vmem:[%s3163_s29 + $0x70] ss:$8 sps:$4 sm:$0xff]   ;;  %v2742_v9 = vld [vmem:[%s3163_s29 + $0xc4] ss:$8 sps:$4 sm:$0xff]  }
  0x3b   : > { %v2737_v11 = vld [vmem:[%s3163_s29 + $0x80] ss:$8 sps:$4 sm:$0xff]   ;;  %v2743_v13 = vld [vmem:[%s3163_s29 + $0x94] ss:$8 sps:$4 sm:$0xff]   ;;  %v2747_v18 = vld [vmem:[%s3163_s29 + $0x90] ss:$8 sps:$4 sm:$0xff]  }
  0x3c   : > { %v2740_v12 = vld [vmem:[%s3163_s29 + $0xc0] ss:$8 sps:$4 sm:$0xff]   ;;  %v2745_v14 = vld [vmem:[%s3163_s29 + $0xd4] ss:$8 sps:$4 sm:$0xff]   ;;  %v2748_v19 = vld [vmem:[%s3163_s29 + $0xd0] ss:$8 sps:$4 sm:$0xff]  }
  0x3d   : > { %2287 = vmatpush3.bf16.msra.mxu0 %v3140_v47  ;;  %2327 = vmatpush3.bf16.msra.mxu1 %v3140_v47  ;;  %v2774_v15 = vld [vmem:[%s3585_s3] sm:$0xff]   ;;  %v2775_v16 = vld [vmem:[%s3585_s3 + $0x48] sm:$0xff]   ;;  %v2777_v22 = vld [vmem:[%s3585_s3 + $0x50] sm:$0xff]  }
  0x3e   : > { %2288 = vmatprep.subr.bf16.mxu0 %v3147_v48  ;;  %2328 = vmatprep.subr.bf16.mxu1 %v3147_v48  ;;  %v2776_v17 = vld [vmem:[%s3585_s3 + $0x8] sm:$0xff]   ;;  %v2778_v23 = vld [vmem:[%s3585_s3 + $0x10] sm:$0xff]   ;;  %v2780_v29 = vld [vmem:[%s3585_s3 + $0x18] sm:$0xff]  }
  0x3f   : > { %v2749_v20 = vld [vmem:[%s3163_s29 + $0xa4] ss:$8 sps:$4 sm:$0xff]   ;;  %v2753_v25 = vld [vmem:[%s3163_s29 + $0xa0] ss:$8 sps:$4 sm:$0xff]   ;;  %v2755_v27 = vld [vmem:[%s3163_s29 + $0xb4] ss:$8 sps:$4 sm:$0xff]  }
  0x40   : > { %v2751_v21 = vld [vmem:[%s3163_s29 + $0xe4] ss:$8 sps:$4 sm:$0xff]   ;;  %v2754_v26 = vld [vmem:[%s3163_s29 + $0xe0] ss:$8 sps:$4 sm:$0xff]   ;;  %v2757_v28 = vld [vmem:[%s3163_s29 + $0xf4] ss:$8 sps:$4 sm:$0xff]  }
  0x41   : > { %2289 = vmatpush3.bf16.msra.mxu0 %v3154_v49  ;;  %2329 = vmatpush3.bf16.msra.mxu1 %v3154_v49  ;;  %v2781_v30 = vld [vmem:[%s3585_s3 + $0x60] sm:$0xff]   ;;  %v2759_v32 = vld [vmem:[%s3163_s29 + $0xb0] ss:$8 sps:$4 sm:$0xff]   ;;  %v2792_v51 = vld [vmem:[%s3585_s3 + $0x88] sm:$0xff]  }
  0x42   : > { %2290 = vmatprep.subr.bf16.mxu0 %v3161_v50  ;;  %2330 = vmatprep.subr.bf16.mxu1 %v3161_v50  ;;  %v2782_v31 = vld [vmem:[%s3585_s3 + $0x20] sm:$0xff]   ;;  %v2760_v33 = vld [vmem:[%s3163_s29 + $0xf0] ss:$8 sps:$4 sm:$0xff]  }
  0x43   : > { %v2763_v34 = vld [vmem:[%s3163_s29 + $0x104] ss:$8 sps:$4 sm:$0xff]   ;;  %v2761_v35 = vld [vmem:[%s3163_s29 + $0x100] ss:$8 sps:$4 sm:$0xff]   ;;  %v2764_v36 = vld [vmem:[%s3163_s29 + $0x114] ss:$8 sps:$4 sm:$0xff]  }
  0x44   : > { %v2766_v37 = vld [vmem:[%s3163_s29 + $0x110] ss:$8 sps:$4 sm:$0xff]   ;;  %v2767_v38 = vld [vmem:[%s3163_s29 + $0x124] ss:$8 sps:$4 sm:$0xff]   ;;  %v2769_v39 = vld [vmem:[%s3163_s29 + $0x120] ss:$8 sps:$4 sm:$0xff]  }
  0x45   : > { %2291 = vmatpush3.bf16.msra.mxu0 %v3172_v53  ;;  %2331 = vmatpush3.bf16.msra.mxu1 %v3172_v53  ;;  %v2793_v52 = vld [vmem:[%s3585_s3 + $0xd0] sm:$0xff]  }
  0x46   : > { %2292 = vmatprep.subr.bf16.mxu0 %v3179_v54  ;;  %2332 = vmatprep.subr.bf16.mxu1 %v3179_v54 }
  0x49   : > { %2293 = vmatpush3.bf16.msra.mxu0 %v3186_v55  ;;  %2333 = vmatpush3.bf16.msra.mxu1 %v3186_v55 }
  0x4a   : > { %2294 = vmatprep.subr.bf16.mxu0 %v3193_v56  ;;  %2334 = vmatprep.subr.bf16.mxu1 %v3193_v56 }
  0x4d   : > { %2295 = vmatpush3.bf16.msra.mxu0 %v3200_v57  ;;  %2335 = vmatpush3.bf16.msra.mxu1 %v3200_v57 }
  0x4e   : > { %2360 = vmatprep.subr.bf16.mxu0 %v3089_v40  ;;  %2400 = vmatprep.subr.bf16.mxu1 %v3089_v40 }
  0x50   : > { %740 = vmatmul.mubr.bf16.vlgmr.msra.gmra.mrb[0].mxu0 %v2713_v58  ;;  %866 = vmatmul.mubr.bf16.vlgmr.msra.gmra.mrb[0].mxu1 %v2716_v59  ;;  %v2799_v58 = vld [vmem:[%s3585_s3 + $0xe8] sm:$0xff]  }
  0x51   : > { %2361 = vmatpush3.bf16.msra.mxu0 %v3094_v41  ;;  %2401 = vmatpush3.bf16.msra.mxu1 %v3094_v41  ;;  %v2800_v59 = vld [vmem:[%s3585_s3 + $0xa8] sm:$0xff]  }
  0x52   : > { %2362 = vmatprep.subr.bf16.mxu0 %v3101_v42  ;;  %2402 = vmatprep.subr.bf16.mxu1 %v3101_v42 }
  0x53   : > { %747 = vmatprep.mubr.bf16.mxu0 %v2719_v60  ;;  %873 = vmatprep.mubr.bf16.mxu1 %v2721_v61  ;;  %v2801_v60 = vld [vmem:[%s3585_s3 + $0xf0] sm:$0xff]  }
  0x54   : > { %v2802_v61 = vld [vmem:[%s3585_s3 + $0xb0] sm:$0xff]  }
  0x55   : > { %2363 = vmatpush3.bf16.msra.mxu0 %v3108_v43  ;;  %2403 = vmatpush3.bf16.msra.mxu1 %v3108_v43 }
  0x56   : > { %2364 = vmatprep.subr.bf16.mxu0 %v3115_v44  ;;  %2404 = vmatprep.subr.bf16.mxu1 %v3115_v44 }
  0x58   : > { %748 = vmatmul.mubr.bf16.gmra.mrb[4].mxu0 %v2723_v62  ;;  %874 = vmatmul.mubr.bf16.gmra.mrb[4].mxu1 %v2724_v63  ;;  %v2803_v62 = vld [vmem:[%s3585_s3 + $0xf8] sm:$0xff]  }
  0x59   : > { %2365 = vmatpush3.bf16.msra.mxu0 %v3122_v45  ;;  %2405 = vmatpush3.bf16.msra.mxu1 %v3122_v45  ;;  %v2804_v63 = vld [vmem:[%s3585_s3 + $0xb8] sm:$0xff]  }
  0x5a   : > { %2366 = vmatprep.subr.bf16.mxu0 %v3132_v46  ;;  %2406 = vmatprep.subr.bf16.mxu1 %v3132_v46 }
  0x5b   : > { %755 = vmatprep.mubr.bf16.mxu0 %v2725_v0  ;;  %881 = vmatprep.mubr.bf16.mxu1 %v2727_v1  ;;  %v2805_v0 = vld [vmem:[%s3585_s3 + $0x100] sm:$0xff]  }
  0x5d   : > { %2367 = vmatpush3.bf16.msra.mxu0 %v3140_v47  ;;  %2407 = vmatpush3.bf16.msra.mxu1 %v3140_v47 }
  0x5e   : > { %2368 = vmatprep.subr.bf16.mxu0 %v3147_v48  ;;  %2408 = vmatprep.subr.bf16.mxu1 %v3147_v48 }
  0x60   : > { %756 = vmatmul.mubr.bf16.gmra.mrb[8].mxu0 %v2729_v2  ;;  %882 = vmatmul.mubr.bf16.gmra.mrb[8].mxu1 %v2730_v3  ;;  %v3394_v3 = vld [vmem:[%s3584_s2] ss:$0 sm:$0xff] }
  0x61   : > { %2369 = vmatpush3.bf16.msra.mxu0 %v3154_v49  ;;  %2409 = vmatpush3.bf16.msra.mxu1 %v3154_v49 }
  0x62   : > { %2370 = vmatprep.subr.bf16.mxu0 %v3161_v50  ;;  %2410 = vmatprep.subr.bf16.mxu1 %v3161_v50 }
  0x63   : > { %763 = vmatprep.mubr.bf16.mxu0 %v2731_v4  ;;  %889 = vmatprep.mubr.bf16.mxu1 %v2733_v5 }
  0x65   : > { %2371 = vmatpush3.bf16.msra.mxu0 %v3172_v53  ;;  %2411 = vmatpush3.bf16.msra.mxu1 %v3172_v53 }
  0x66   : > { %2372 = vmatprep.subr.bf16.mxu0 %v3179_v54  ;;  %2412 = vmatprep.subr.bf16.mxu1 %v3179_v54 }
  0x68   : > { %764 = vmatmul.mubr.bf16.gmra.mrb[12].mxu0 %v2735_v6  ;;  %890 = vmatmul.mubr.bf16.gmra.mrb[12].mxu1 %v2736_v7 }
  0x69   : > { %2373 = vmatpush3.bf16.msra.mxu0 %v3186_v55  ;;  %2413 = vmatpush3.bf16.msra.mxu1 %v3186_v55 }
  0x6a   : > { %2374 = vmatprep.subr.bf16.mxu0 %v3193_v56  ;;  %2414 = vmatprep.subr.bf16.mxu1 %v3193_v56 }
  0x6b   : > { %991 = vmatprep.mubr.bf16.mxu0 %v2739_v8  ;;  %1117 = vmatprep.mubr.bf16.mxu1 %v2742_v9 }
  0x6d   : > { %2375 = vmatpush3.bf16.msra.mxu0 %v3200_v57  ;;  %2415 = vmatpush3.bf16.msra.mxu1 %v3200_v57 }
  0x6e   : > { %2440 = vmatprep.subr.bf16.mxu0 %v3089_v40  ;;  %2480 = vmatprep.subr.bf16.mxu1 %v2773_v10  ;;  %v2770_v40 = vld [vmem:[%s3163_s29 + $0x134] ss:$8 sps:$4 sm:$0xff]  }
  0x70   : > { %992 = vmatmul.mubr.bf16.vlgmr.msra.gmra.mrb[16].mxu0 %v2737_v11  ;;  %1118 = vmatmul.mubr.bf16.vlgmr.msra.gmra.mrb[16].mxu1 %v2740_v12 }
  0x71   : > { %2441 = vmatpush3.bf16.msra.mxu0 %v3094_v41  ;;  %999 = vmatprep.mubr.bf16.mxu0 %v2743_v13  ;;  %v2783_v41 = vld [vmem:[%s3585_s3 + $0x68] sm:$0xff]  }
  0x72   : > { %2442 = vmatprep.subr.bf16.mxu0 %v3101_v42  ;;  %1125 = vmatprep.mubr.bf16.mxu1 %v2745_v14  ;;  %v2784_v42 = vld [vmem:[%s3585_s3 + $0x28] sm:$0xff]  }
  0x73   : > { %2481 = vmatpush3.bf16.msra.mxu1 %v2774_v15 }
  0x74   : > { %2482 = vmatprep.subr.bf16.mxu1 %v2775_v16 }
  0x75   : > { %2443 = vmatpush3.bf16.msra.mxu0 %v3108_v43  ;;  %v2772_v43 = vld [vmem:[%s3163_s29 + $0x130] ss:$8 sps:$4 sm:$0xff]   ;;  %s2275_s29 = sshll.u32 %s2121_s13, 4  ;;  %s2829_s13 = scalar_lea.vmem %s3540_s21, 16 }
  0x76   : > { %2444 = vmatprep.subr.bf16.mxu0 %v3115_v44  ;;  %v2785_v44 = vld [vmem:[%s3585_s3 + $0x70] sm:$0xff]   ;;  %s3538_s24 = scalar_lea.hbm %s3591_s9, %s2275_s29  ;;  %p2830_p13 = scmp.ne.s32.totalorder %s3540_s21, %s2829_s13 }
  0x77   : > { %2483 = vmatpush3.bf16.msra.mxu1 %v2776_v17  ;;  %p2837_p3 = scmp.lt.s32.totalorder %s2835_s14, %s2829_s13 }
  0x78   : > { %1000 = vmatmul.mubr.bf16.gmra.mrb[20].mxu0 %v2747_v18  ;;  %1126 = vmatmul.mubr.bf16.gmra.mrb[20].mxu1 %v2748_v19  ;;  %p2831_p0 = pnand %p2830_p13, %p2984_p6 }
  0x79   : > { %2445 = vmatpush3.bf16.msra.mxu0 %v3122_v45  ;;  %1007 = vmatprep.mubr.bf16.mxu0 %v2749_v20  ;;  %v2786_v45 = vld [vmem:[%s3585_s3 + $0x30] sm:$0xff]   ;;  %p2838_p4 = por %p2837_p3, %p2836_p2 }
  0x7a   : > { %2446 = vmatprep.subr.bf16.mxu0 %v3132_v46  ;;  %1133 = vmatprep.mubr.bf16.mxu1 %v2751_v21  ;;  %v2787_v46 = vld [vmem:[%s3585_s3 + $0x78] sm:$0xff]   ;;  %p2832_p1 = pneg %p2831_p0 }
  0x7b   : > { %2484 = vmatprep.subr.bf16.mxu1 %v2777_v22 }
  0x7c   : > { %2485 = vmatpush3.bf16.msra.mxu1 %v2778_v23  ;;  %p2839_p5 = pnand %p2838_p4, %p2832_p1 }
  0x7d   : > { %2447 = vmatpush3.bf16.msra.mxu0 %v3140_v47  ;;  %2486 = vmatprep.subr.bf16.mxu1 %v2779_v24  ;;  %v2788_v47 = vld [vmem:[%s3585_s3 + $0x38] sm:$0xff]  }
  0x7e   : > { %2448 = vmatprep.subr.bf16.mxu0 %v3147_v48  ;;  %v2789_v48 = vld [vmem:[%s3585_s3 + $0xc0] sm:$0xff]  }
  0x80   : > { %1008 = vmatmul.mubr.bf16.gmra.mrb[24].mxu0 %v2753_v25  ;;  %1134 = vmatmul.mubr.bf16.gmra.mrb[24].mxu1 %v2754_v26 }
  0x81   : > { %2449 = vmatpush3.bf16.msra.mxu0 %v3154_v49  ;;  %1015 = vmatprep.mubr.bf16.mxu0 %v2755_v27  ;;  %v2790_v49 = vld [vmem:[%s3585_s3 + $0x80] sm:$0xff]  }
  0x82   : > { %2450 = vmatprep.subr.bf16.mxu0 %v3161_v50  ;;  %1141 = vmatprep.mubr.bf16.mxu1 %v2757_v28  ;;  %v2791_v50 = vld [vmem:[%s3585_s3 + $0xc8] sm:$0xff]  }
  0x83   : > { %2487 = vmatpush3.bf16.msra.mxu1 %v2780_v29 }
  0x84   : > { %2488 = vmatprep.subr.bf16.mxu1 %v2781_v30 }
  0x85   : > { %2451 = vmatpush3.bf16.msra.mxu0 %v3172_v53  ;;  %v2794_v53 = vld [vmem:[%s3585_s3 + $0x90] sm:$0xff]  }
  0x86   : > { %2452 = vmatprep.subr.bf16.mxu0 %v3179_v54  ;;  %v2795_v54 = vld [vmem:[%s3585_s3 + $0xd8] sm:$0xff]  }
  0x87   : > { %2489 = vmatpush3.bf16.msra.mxu1 %v2782_v31 }
  0x88   : > { %1016 = vmatmul.mubr.bf16.gmra.mrb[28].mxu0 %v2759_v32  ;;  %1142 = vmatmul.mubr.bf16.gmra.mrb[28].mxu1 %v2760_v33 }
  0x89   : > { %2453 = vmatpush3.bf16.msra.mxu0 %v3186_v55  ;;  %1243 = vmatprep.mubr.bf16.mxu0 %v2763_v34  ;;  %v2796_v55 = vld [vmem:[%s3585_s3 + $0x98] sm:$0xff]   ;;  %v2806_v34 = vld [vmem:[%s3585_s3 + $0x108] sm:$0xff]  }
  0x8a   : > { %2454 = vmatprep.subr.bf16.mxu0 %v3193_v56  ;;  %2490 = vmatprep.subr.bf16.mxu1 %v2783_v41  ;;  %v2797_v56 = vld [vmem:[%s3585_s3 + $0xe0] sm:$0xff]  }
  0x8b   : > { %2491 = vmatpush3.bf16.msra.mxu1 %v2784_v42  ;;  %v2807_v42 = vld [vmem:[%s3585_s3 + $0x110] sm:$0xff]  }
  0x8c   : > { %2492 = vmatprep.subr.bf16.mxu1 %v2785_v44 }
  0x8d   : > { %2455 = vmatpush3.bf16.msra.mxu0 %v3200_v57  ;;  %v2798_v57 = vld [vmem:[%s3585_s3 + $0xa0] sm:$0xff]  }
  0x8e   : > { %2520 = vmatprep.subr.bf16.mxu0 %v2789_v48 }
  0x8f   : > { %2493 = vmatpush3.bf16.msra.mxu1 %v2786_v45 }
  0x90   : > { %1244 = vmatmul.mubr.bf16.vlgmr.msra.gmra.mrb[32].mxu0 %v2761_v35  ;;  %2494 = vmatprep.subr.bf16.mxu1 %v2787_v46 }
  0x91   : > { %1251 = vmatprep.mubr.bf16.mxu0 %v2764_v36  ;;  %2521 = vmatpush3.bf16.msra.mxu0 %v2790_v49 }
  0x92   : > { %2522 = vmatprep.subr.bf16.mxu0 %v2791_v50 }
  0x93   : > { %2495 = vmatpush3.bf16.msra.mxu1 %v2788_v47 }
  0x94   : > { %2590 = vmatprep.subr.bf16.mxu1 %v2805_v0 }
  0x95   : > { %2523 = vmatpush3.bf16.msra.mxu0 %v2792_v51 }
  0x96   : > { %2524 = vmatprep.subr.bf16.mxu0 %v2793_v52 }
  0x98   : > { %1252 = vmatmul.mubr.bf16.gmra.mrb[36].mxu0 %v2766_v37 }
  0x99   : > { %1259 = vmatprep.mubr.bf16.mxu0 %v2767_v38  ;;  %2525 = vmatpush3.bf16.msra.mxu0 %v2794_v53 }
  0x9a   : > { %2526 = vmatprep.subr.bf16.mxu0 %v2795_v54 }
  0x9d   : > { %2527 = vmatpush3.bf16.msra.mxu0 %v2796_v55 }
  0x9e   : > { %2528 = vmatprep.subr.bf16.mxu0 %v2797_v56 }
  0xa0   : > { %1260 = vmatmul.mubr.bf16.gmra.mrb[40].mxu0 %v2769_v39 }
  0xa1   : > { %1267 = vmatprep.mubr.bf16.mxu0 %v2770_v40  ;;  %2529 = vmatpush3.bf16.msra.mxu0 %v2798_v57 }
  0xa2   : > { %2530 = vmatprep.subr.bf16.mxu0 %v2799_v58  ;;  %v2808_v58 = vld [vmem:[%s3585_s3 + $0x118] sm:$0xff]  }
  0xa5   : > { %2531 = vmatpush3.bf16.msra.mxu0 %v2800_v59 }
  0xa6   : > { %2532 = vmatprep.subr.bf16.mxu0 %v2801_v60 }
  0xa8   : > { %1268 = vmatmul.mubr.bf16.gmra.mrb[44].mxu0 %v2772_v43 }
  0xa9   : > { %2533 = vmatpush3.bf16.msra.mxu0 %v2802_v61 }
  0xaa   : > { %2534 = vmatprep.subr.bf16.mxu0 %v2803_v62 }
  0xad   : > { %2535 = vmatpush3.bf16.msra.mxu0 %v2804_v63 }
 0x123   : > { %v2296_v1 = vpop.f32.mrb[0].mxu0  ;;  %v2336_v2 = vpop.f32.mrb[0].mxu1 }
 0x124   : > { %v2297_v4 = vpop.f32.mrb[1].mxu0  ;;  %v2337_v5 = vpop.f32.mrb[1].mxu1 }
 0x125   : > { %v2298_v6 = vadd.f32 %v2297_v4, %v2296_v1  ;;  %v2338_v7 = vadd.f32 %v2337_v5, %v2336_v2  ;;  %v2299_v8 = vpop.f32.mrb[2].mxu0  ;;  %v2339_v9 = vpop.f32.mrb[2].mxu1  ;;  %v2809_v2 = vld [vmem:[%s3585_s3 + $0x120] sm:$0xff]  }
 0x126   : > { %v2300_v10 = vpop.f32.mrb[3].mxu0  ;;  %v2340_v11 = vpop.f32.mrb[3].mxu1 }
 0x127   : > { %v742_v12 = vadd.f32 %v2298_v6, %v3394_v3  ;;  %v868_v13 = vadd.f32 %v2338_v7, %v3394_v3  ;;  %v2301_v14 = vadd.f32 %v2300_v10, %v2299_v8  ;;  %v2341_v15 = vadd.f32 %v2340_v11, %v2339_v9 }
 0x129   : > { %v898_v16 = vmax.f32 %v868_v13, 0.0  ;;  %v745_v17 = vadd.f32 %v2301_v14, %v3394_v3  ;;  %v871_v18 = vadd.f32 %v2341_v15, %v3394_v3  ;;  %v772_v19 = vmax.f32 %v742_v12, 0.0 }
 0x12b   : > { %v773_v20 = vmax.f32 %v745_v17, 0.0  ;;  %v899_v21 = vmax.f32 %v871_v18, 0.0  ;;  %v2302_v22 = vpop.f32.mrb[4].mxu0  ;;  %v2342_v23 = vpop.f32.mrb[4].mxu1 }
 0x12c   : > { %v2303_v24 = vpop.f32.mrb[5].mxu0  ;;  %v2343_v25 = vpop.f32.mrb[5].mxu1 }
 0x12d   : > { %v780_v26 = vpack.c.bf16 %v773_v20, %v772_v19  ;;  %v2304_v27 = vadd.f32 %v2303_v24, %v2302_v22  ;;  %v2344_v28 = vadd.f32 %v2343_v25, %v2342_v23  ;;  %v2305_v29 = vpop.f32.mrb[6].mxu0  ;;  %v2345_v30 = vpop.f32.mrb[6].mxu1  ;;  %v906_v31 = vpack.c.bf16 %v899_v21, %v898_v16  ;;  %v2810_v19 = vld [vmem:[%s3585_s3 + $0x128] sm:$0xff]  }
 0x12e   : > { %v2306_v32 = vpop.f32.mrb[7].mxu0  ;;  %v2346_v33 = vpop.f32.mrb[7].mxu1 }
 0x12f   : > { %v750_v35 = vadd.f32 %v2304_v27, %v3394_v3  ;;  %v876_v36 = vadd.f32 %v2344_v28, %v3394_v3  ;;  %v2307_v37 = vadd.f32 %v2306_v32, %v2305_v29  ;;  %v2347_v38 = vadd.f32 %v2346_v33, %v2345_v30  ;;  %1647 = vmatprep.mubr.bf16.mxu1 %v906_v31  ;;  %v2811_v27 = vld [vmem:[%s3585_s3 + $0x130] sm:$0xff]  }
 0x130   : > { %1648 = vmatmul.mubr.bf16.vlgmr.msra.gmra.mrb[32].mxu1 %v780_v26 }
 0x131   : > { %v900_v39 = vmax.f32 %v876_v36, 0.0  ;;  %v753_v40 = vadd.f32 %v2307_v37, %v3394_v3  ;;  %v879_v41 = vadd.f32 %v2347_v38, %v3394_v3  ;;  %2591 = vmatpush3.bf16.msra.mxu1 %v2805_v0  ;;  %v774_v43 = vmax.f32 %v750_v35, 0.0 }
 0x132   : > { %2592 = vmatprep.subr.bf16.mxu1 %v2806_v34 }
 0x133   : > { %v775_v44 = vmax.f32 %v753_v40, 0.0  ;;  %v901_v45 = vmax.f32 %v879_v41, 0.0  ;;  %v2308_v46 = vpop.f32.mrb[8].mxu0  ;;  %v2348_v47 = vpop.f32.mrb[8].mxu1 }
 0x134   : > { %v2309_v48 = vpop.f32.mrb[9].mxu0  ;;  %v2349_v49 = vpop.f32.mrb[9].mxu1 }
 0x135   : > { %v2310_v50 = vadd.f32 %v2309_v48, %v2308_v46  ;;  %v2350_v51 = vadd.f32 %v2349_v49, %v2348_v47  ;;  %v2311_v52 = vpop.f32.mrb[10].mxu0  ;;  %v2351_v53 = vpop.f32.mrb[10].mxu1  ;;  %v907_v54 = vpack.c.bf16 %v901_v45, %v900_v39  ;;  %v781_v55 = vpack.c.bf16 %v775_v44, %v774_v43  ;;  %2593 = vmatpush3.bf16.msra.mxu1 %v2806_v34  ;;  %v2812_v43 = vld [vmem:[%s3585_s3 + $0x138] sm:$0xff]  }
 0x136   : > { %v2312_v56 = vpop.f32.mrb[11].mxu0  ;;  %v2352_v57 = vpop.f32.mrb[11].mxu1  ;;  %2594 = vmatprep.subr.bf16.mxu1 %v2807_v42 }
 0x137   : > { %v758_v59 = vadd.f32 %v2310_v50, %v3394_v3  ;;  %v884_v60 = vadd.f32 %v2350_v51, %v3394_v3  ;;  %v2313_v61 = vadd.f32 %v2312_v56, %v2311_v52  ;;  %v2353_v62 = vadd.f32 %v2352_v57, %v2351_v53  ;;  %1655 = vmatprep.mubr.bf16.mxu1 %v907_v54 }
 0x138   : > { %1656 = vmatmul.mubr.bf16.gmra.mrb[36].mxu1 %v781_v55 }
 0x139   : > { %v902_v63 = vmax.f32 %v884_v60, 0.0  ;;  %v761_v0 = vadd.f32 %v2313_v61, %v3394_v3  ;;  %v887_v1 = vadd.f32 %v2353_v62, %v3394_v3  ;;  %2595 = vmatpush3.bf16.msra.mxu1 %v2807_v42  ;;  %v776_v4 = vmax.f32 %v758_v59, 0.0 }
 0x13a   : > { %2596 = vmatprep.subr.bf16.mxu1 %v2808_v58 }
 0x13b   : > { %v777_v5 = vmax.f32 %v761_v0, 0.0  ;;  %v903_v6 = vmax.f32 %v887_v1, 0.0  ;;  %v2314_v7 = vpop.f32.mrb[12].mxu0  ;;  %v2354_v8 = vpop.f32.mrb[12].mxu1 }
 0x13c   : > { %v2315_v9 = vpop.f32.mrb[13].mxu0  ;;  %v2355_v10 = vpop.f32.mrb[13].mxu1 }
 0x13d   : > { %v2316_v11 = vadd.f32 %v2315_v9, %v2314_v7  ;;  %v2356_v12 = vadd.f32 %v2355_v10, %v2354_v8  ;;  %v2317_v13 = vpop.f32.mrb[14].mxu0  ;;  %v2357_v14 = vpop.f32.mrb[14].mxu1  ;;  %v908_v15 = vpack.c.bf16 %v903_v6, %v902_v63  ;;  %v782_v16 = vpack.c.bf16 %v777_v5, %v776_v4  ;;  %2597 = vmatpush3.bf16.msra.mxu1 %v2808_v58 }
 0x13e   : > { %v2318_v17 = vpop.f32.mrb[15].mxu0  ;;  %v2358_v18 = vpop.f32.mrb[15].mxu1  ;;  %2598 = vmatprep.subr.bf16.mxu1 %v2809_v2 }
 0x13f   : > { %v766_v20 = vadd.f32 %v2316_v11, %v3394_v3  ;;  %v892_v21 = vadd.f32 %v2356_v12, %v3394_v3  ;;  %v2319_v22 = vadd.f32 %v2318_v17, %v2317_v13  ;;  %v2359_v23 = vadd.f32 %v2358_v18, %v2357_v14  ;;  %1663 = vmatprep.mubr.bf16.mxu1 %v908_v15 }
 0x140   : > { %1664 = vmatmul.mubr.bf16.gmra.mrb[40].mxu1 %v782_v16 }
 0x141   : > { %v904_v24 = vmax.f32 %v892_v21, 0.0  ;;  %v769_v25 = vadd.f32 %v2319_v22, %v3394_v3  ;;  %v895_v26 = vadd.f32 %v2359_v23, %v3394_v3  ;;  %2599 = vmatpush3.bf16.msra.mxu1 %v2809_v2  ;;  %v778_v28 = vmax.f32 %v766_v20, 0.0 }
 0x142   : > { %2600 = vmatprep.subr.bf16.mxu1 %v2810_v19 }
 0x143   : > { %v779_v29 = vmax.f32 %v769_v25, 0.0  ;;  %v905_v30 = vmax.f32 %v895_v26, 0.0  ;;  %v2376_v31 = vpop.f32.mrb[16].mxu0  ;;  %v2416_v32 = vpop.f32.mrb[16].mxu1 }
 0x144   : > { %v2377_v33 = vpop.f32.mrb[17].mxu0  ;;  %v2417_v34 = vpop.f32.mrb[17].mxu1 }
 0x145   : > { %v2378_v35 = vadd.f32 %v2377_v33, %v2376_v31  ;;  %v2418_v36 = vadd.f32 %v2417_v34, %v2416_v32  ;;  %v2379_v37 = vpop.f32.mrb[18].mxu0  ;;  %v2419_v38 = vpop.f32.mrb[18].mxu1  ;;  %v909_v39 = vpack.c.bf16 %v905_v30, %v904_v24  ;;  %v783_v40 = vpack.c.bf16 %v779_v29, %v778_v28  ;;  %2601 = vmatpush3.bf16.msra.mxu1 %v2810_v19 }
 0x146   : > { %v2380_v41 = vpop.f32.mrb[19].mxu0  ;;  %v2420_v42 = vpop.f32.mrb[19].mxu1  ;;  %2602 = vmatprep.subr.bf16.mxu1 %v2811_v27 }
 0x147   : > { %v994_v44 = vadd.f32 %v2378_v35, %v3394_v3  ;;  %v1120_v45 = vadd.f32 %v2418_v36, %v3394_v3  ;;  %v2381_v46 = vadd.f32 %v2380_v41, %v2379_v37  ;;  %v2421_v47 = vadd.f32 %v2420_v42, %v2419_v38  ;;  %1671 = vmatprep.mubr.bf16.mxu1 %v909_v39 }
 0x148   : > { %1672 = vmatmul.mubr.bf16.gmra.mrb[44].mxu1 %v783_v40 }
 0x149   : > { %v1150_v48 = vmax.f32 %v1120_v45, 0.0  ;;  %v997_v49 = vadd.f32 %v2381_v46, %v3394_v3  ;;  %v1123_v50 = vadd.f32 %v2421_v47, %v3394_v3  ;;  %2603 = vmatpush3.bf16.msra.mxu1 %v2811_v27  ;;  %v1024_v51 = vmax.f32 %v994_v44, 0.0 }
 0x14a   : > { %2604 = vmatprep.subr.bf16.mxu1 %v2812_v43 }
 0x14b   : > { %v1025_v52 = vmax.f32 %v997_v49, 0.0  ;;  %v1151_v53 = vmax.f32 %v1123_v50, 0.0  ;;  %v2382_v54 = vpop.f32.mrb[20].mxu0  ;;  %v2422_v55 = vpop.f32.mrb[20].mxu1 }
 0x14c   : > { %v2383_v56 = vpop.f32.mrb[21].mxu0  ;;  %v2423_v57 = vpop.f32.mrb[21].mxu1 }
 0x14d   : > { %v1032_v58 = vpack.c.bf16 %v1025_v52, %v1024_v51  ;;  %v2384_v59 = vadd.f32 %v2383_v56, %v2382_v54  ;;  %v2424_v60 = vadd.f32 %v2423_v57, %v2422_v55  ;;  %v2385_v61 = vpop.f32.mrb[22].mxu0  ;;  %v2425_v62 = vpop.f32.mrb[22].mxu1  ;;  %v1158_v63 = vpack.c.bf16 %v1151_v53, %v1150_v48  ;;  %2605 = vmatpush3.bf16.msra.mxu1 %v2812_v43 }
 0x14e   : > { %v2386_v0 = vpop.f32.mrb[23].mxu0  ;;  %v2426_v1 = vpop.f32.mrb[23].mxu1 }
 0x14f   : > { %v1002_v2 = vadd.f32 %v2384_v59, %v3394_v3  ;;  %v1128_v4 = vadd.f32 %v2424_v60, %v3394_v3  ;;  %v2387_v5 = vadd.f32 %v2386_v0, %v2385_v61  ;;  %v2427_v6 = vadd.f32 %v2426_v1, %v2425_v62  ;;  %1712 = vmatprep.mubr.bf16.mxu0 %v1158_v63 }
 0x150   : > { %1713 = vmatmul.mubr.bf16.vlgmr.msra.gmra.mrb[48].mxu0 %v1032_v58 }
 0x151   : > { %v1152_v7 = vmax.f32 %v1128_v4, 0.0  ;;  %v1005_v8 = vadd.f32 %v2387_v5, %v3394_v3  ;;  %v1131_v9 = vadd.f32 %v2427_v6, %v3394_v3  ;;  %v1026_v10 = vmax.f32 %v1002_v2, 0.0 }
 0x153   : > { %v1027_v11 = vmax.f32 %v1005_v8, 0.0  ;;  %v1153_v12 = vmax.f32 %v1131_v9, 0.0  ;;  %v2388_v13 = vpop.f32.mrb[24].mxu0  ;;  %v2428_v14 = vpop.f32.mrb[24].mxu1 }
 0x154   : > { %v2389_v15 = vpop.f32.mrb[25].mxu0  ;;  %v2429_v16 = vpop.f32.mrb[25].mxu1 }
 0x155   : > { %v2390_v17 = vadd.f32 %v2389_v15, %v2388_v13  ;;  %v2430_v18 = vadd.f32 %v2429_v16, %v2428_v14  ;;  %v2391_v19 = vpop.f32.mrb[26].mxu0  ;;  %v2431_v20 = vpop.f32.mrb[26].mxu1  ;;  %v1159_v21 = vpack.c.bf16 %v1153_v12, %v1152_v7  ;;  %v1033_v22 = vpack.c.bf16 %v1027_v11, %v1026_v10 }
 0x156   : > { %v2392_v23 = vpop.f32.mrb[27].mxu0  ;;  %v2432_v24 = vpop.f32.mrb[27].mxu1 }
 0x157   : > { %v1010_v25 = vadd.f32 %v2390_v17, %v3394_v3  ;;  %v1136_v26 = vadd.f32 %v2430_v18, %v3394_v3  ;;  %v2393_v27 = vadd.f32 %v2392_v23, %v2391_v19  ;;  %v2433_v28 = vadd.f32 %v2432_v24, %v2431_v20  ;;  %1720 = vmatprep.mubr.bf16.mxu0 %v1159_v21 }
 0x158   : > { %1721 = vmatmul.mubr.bf16.gmra.mrb[52].mxu0 %v1033_v22 }
 0x159   : > { %v1154_v29 = vmax.f32 %v1136_v26, 0.0  ;;  %v1013_v30 = vadd.f32 %v2393_v27, %v3394_v3  ;;  %v1139_v31 = vadd.f32 %v2433_v28, %v3394_v3  ;;  %v1028_v32 = vmax.f32 %v1010_v25, 0.0 }
 0x15b   : > { %v1029_v33 = vmax.f32 %v1013_v30, 0.0  ;;  %v1155_v34 = vmax.f32 %v1139_v31, 0.0  ;;  %v2394_v35 = vpop.f32.mrb[28].mxu0  ;;  %v2434_v36 = vpop.f32.mrb[28].mxu1 }
 0x15c   : > { %v2395_v37 = vpop.f32.mrb[29].mxu0  ;;  %v2435_v38 = vpop.f32.mrb[29].mxu1 }
 0x15d   : > { %v2396_v39 = vadd.f32 %v2395_v37, %v2394_v35  ;;  %v2436_v40 = vadd.f32 %v2435_v38, %v2434_v36  ;;  %v2397_v41 = vpop.f32.mrb[30].mxu0  ;;  %v2437_v42 = vpop.f32.mrb[30].mxu1  ;;  %v1160_v43 = vpack.c.bf16 %v1155_v34, %v1154_v29  ;;  %v1034_v44 = vpack.c.bf16 %v1029_v33, %v1028_v32 }
 0x15e   : > { %v2398_v45 = vpop.f32.mrb[31].mxu0  ;;  %v2438_v46 = vpop.f32.mrb[31].mxu1 }
 0x15f   : > { %v1018_v47 = vadd.f32 %v2396_v39, %v3394_v3  ;;  %v1144_v48 = vadd.f32 %v2436_v40, %v3394_v3  ;;  %v2399_v49 = vadd.f32 %v2398_v45, %v2397_v41  ;;  %v2439_v50 = vadd.f32 %v2438_v46, %v2437_v42  ;;  %1728 = vmatprep.mubr.bf16.mxu0 %v1160_v43  ;;  %v2813_v40 = vld [vmem:[%s3587_s5] sm:$0xff]   ;;  %v2815_v42 = vld [vmem:[%s3587_s5 + $0x10] sm:$0xff]   ;;  %v2816_v43 = vld [vmem:[%s3587_s5 + $0x18] sm:$0xff]  }
 0x160   : > { %1729 = vmatmul.mubr.bf16.gmra.mrb[56].mxu0 %v1034_v44  ;;  %v2893_v41 = vmov 0.0   ;;  %v2817_v44 = vld [vmem:[%s3587_s5 + $0x20] sm:$0xff]   ;;  %v2818_v45 = vld [vmem:[%s3587_s5 + $0x28] sm:$0xff]   ;;  %v2819_v46 = vld [vmem:[%s3587_s5 + $0x30] sm:$0xff]  }
 0x161   : > { %v1156_v51 = vmax.f32 %v1144_v48, 0.0  ;;  %v1021_v52 = vadd.f32 %v2399_v49, %v3394_v3  ;;  %v1147_v53 = vadd.f32 %v2439_v50, %v3394_v3  ;;  %v1030_v54 = vmax.f32 %v1018_v47, 0.0  ;;  %2614 = vmatprep.subr.bf16.mxu0 %v2893_v41  ;;  %2634 = vmatprep.subr.bf16.mxu1 %v2893_v41  ;;  %v2820_v47 = vld [vmem:[%s3587_s5 + $0x38] sm:$0xff]   ;;  %v2821_v48 = vld [vmem:[%s3589_s7] sm:$0xff]   ;;  %v2822_v49 = vld [vmem:[%s3589_s7 + $0x8] sm:$0xff]  }
 0x162   : > { %2615 = vmatpush3.bf16.msra.mxu0 %v2813_v40 }
 0x163   : > { %v1031_v55 = vmax.f32 %v1021_v52, 0.0  ;;  %v1157_v56 = vmax.f32 %v1147_v53, 0.0  ;;  %v2456_v57 = vpop.f32.mrb[32].mxu0  ;;  %2616 = vmatprep.subr.bf16.mxu0 %v2893_v41 }
 0x164   : > { %v2457_v58 = vpop.f32.mrb[33].mxu0 }
 0x165   : > { %v2458_v59 = vadd.f32 %v2457_v58, %v2456_v57  ;;  %v2459_v60 = vpop.f32.mrb[34].mxu0  ;;  %v1161_v61 = vpack.c.bf16 %v1157_v56, %v1156_v51  ;;  %v1035_v62 = vpack.c.bf16 %v1031_v55, %v1030_v54  ;;  %v2823_v55 = vld [vmem:[%s3589_s7 + $0x10] sm:$0xff]   ;;  %v2824_v57 = vld [vmem:[%s3589_s7 + $0x18] sm:$0xff]  }
 0x166   : > { %v2460_v63 = vpop.f32.mrb[35].mxu0 }
 0x167   : > { %v1246_v0 = vadd.f32 %v2458_v59, %v3394_v3  ;;  %v2461_v1 = vadd.f32 %v2460_v63, %v2459_v60  ;;  %1736 = vmatprep.mubr.bf16.mxu0 %v1161_v61  ;;  %v2825_v63 = vld [vmem:[%s3589_s7 + $0x20] sm:$0xff]  }
 0x168   : > { %1737 = vmatmul.mubr.bf16.gmra.mrb[60].mxu0 %v1035_v62 }
 0x169   : > { %v1249_v2 = vadd.f32 %v2461_v1, %v3394_v3  ;;  %v1276_v4 = vmax.f32 %v1246_v0, 0.0  ;;  %2630 = vmatprep.mubr.msk.bf16.mxu0 %vm2894_vm0, %v2893_v41  ;;  %v2826_v1 = vld [vmem:[%s3589_s7 + $0x28] sm:$0xff]  }
 0x16b   : > { %v1277_v5 = vmax.f32 %v1249_v2, 0.0  ;;  %v2462_v6 = vpop.f32.mrb[36].mxu0 }
 0x16c   : > { %v2463_v7 = vpop.f32.mrb[37].mxu0 }
 0x16d   : > { %v2464_v8 = vadd.f32 %v2463_v7, %v2462_v6  ;;  %v2465_v9 = vpop.f32.mrb[38].mxu0  ;;  %v1284_v10 = vpack.c.bf16 %v1277_v5, %v1276_v4 }
 0x16e   : > { %v2466_v11 = vpop.f32.mrb[39].mxu0 }
 0x16f   : > { %v1254_v12 = vadd.f32 %v2464_v8, %v3394_v3  ;;  %v2467_v13 = vadd.f32 %v2466_v11, %v2465_v9  ;;  %2606 = vmatprep.mubr.bf16.mxu1 %v1284_v10 }
 0x171   : > { %v1257_v14 = vadd.f32 %v2467_v13, %v3394_v3  ;;  %v1278_v15 = vmax.f32 %v1254_v12, 0.0 }
 0x173   : > { %v1279_v16 = vmax.f32 %v1257_v14, 0.0  ;;  %v2468_v17 = vpop.f32.mrb[40].mxu0 }
 0x174   : > { %v2469_v18 = vpop.f32.mrb[41].mxu0 }
 0x175   : > { %v1285_v19 = vpack.c.bf16 %v1279_v16, %v1278_v15  ;;  %v2470_v20 = vadd.f32 %v2469_v18, %v2468_v17  ;;  %v2471_v21 = vpop.f32.mrb[42].mxu0  ;;  %v2218_v15 = vld [vmem:[%s3586_s4] ss:$0 sm:$0xff] }
 0x176   : > { %v2472_v22 = vpop.f32.mrb[43].mxu0 }
 0x177   : > { %v1262_v23 = vadd.f32 %v2470_v20, %v3394_v3  ;;  %v2473_v24 = vadd.f32 %v2472_v22, %v2471_v21  ;;  %2607 = vmatmul.mubr.bf16.vlgmr.msra.gmra.mrb[48].mxu1 %v1285_v19 }
 0x178   : > { %2635 = vmatpush3.bf16.msra.mxu1 %v2821_v48 }
 0x179   : > { %v1265_v25 = vadd.f32 %v2473_v24, %v3394_v3  ;;  %v1280_v26 = vmax.f32 %v1262_v23, 0.0  ;;  %2636 = vmatprep.subr.bf16.mxu1 %v2893_v41 }
 0x17b   : > { %v1281_v27 = vmax.f32 %v1265_v25, 0.0  ;;  %v2474_v28 = vpop.f32.mrb[44].mxu0 }
 0x17c   : > { %v2475_v29 = vpop.f32.mrb[45].mxu0  ;;  %2637 = vmatpush3.bf16.msra.mxu1 %v2822_v49 }
 0x17d   : > { %v2476_v30 = vadd.f32 %v2475_v29, %v2474_v28  ;;  %v2477_v31 = vpop.f32.mrb[46].mxu0  ;;  %v1286_v32 = vpack.c.bf16 %v1281_v27, %v1280_v26  ;;  %2638 = vmatprep.subr.bf16.mxu1 %v2893_v41 }
 0x17e   : > { %v2478_v33 = vpop.f32.mrb[47].mxu0 }
 0x17f   : > { %v1270_v34 = vadd.f32 %v2476_v30, %v3394_v3  ;;  %v2479_v35 = vadd.f32 %v2478_v33, %v2477_v31  ;;  %2610 = vmatprep.mubr.bf16.mxu1 %v1286_v32 }
 0x180   : > { %2639 = vmatpush3.bf16.msra.mxu1 %v2823_v55 }
 0x181   : > { %v1273_v36 = vadd.f32 %v2479_v35, %v3394_v3  ;;  %v1282_v37 = vmax.f32 %v1270_v34, 0.0  ;;  %v2814_v3 = vld [vmem:[%s3587_s5 + $0x8] sm:$0xff]   ;;  %2640 = vmatprep.subr.bf16.mxu1 %v2893_v41 }
 0x182   : > { %2617 = vmatpush3.bf16.msra.mxu0 %v2814_v3 }
 0x183   : > { %v1283_v38 = vmax.f32 %v1273_v36, 0.0  ;;  %2618 = vmatprep.subr.bf16.mxu0 %v2893_v41 }
 0x184   : > { %2641 = vmatpush3.bf16.msra.mxu1 %v2824_v57 }
 0x185   : > { %v1287_v39 = vpack.c.bf16 %v1283_v38, %v1282_v37  ;;  %2642 = vmatprep.subr.bf16.mxu1 %v2893_v41 }
 0x186   : > { %2619 = vmatpush3.bf16.msra.mxu0 %v2815_v42 }
 0x187   : > { %2611 = vmatmul.mubr.bf16.gmra.mrb[52].mxu1 %v1287_v39  ;;  %2620 = vmatprep.subr.bf16.mxu0 %v2893_v41 }
 0x188   : > { %2650 = vmatprep.mubr.msk.bf16.mxu1 %vm2894_vm0, %v2893_v41  ;;  %2643 = vmatpush3.bf16.msra.mxu1 %v2825_v63 }
 0x189   : > { %2644 = vmatprep.subr.bf16.mxu1 %v2893_v41 }
 0x18a   : > { %2621 = vmatpush3.bf16.msra.mxu0 %v2816_v43 }
 0x18b   : > { %2622 = vmatprep.subr.bf16.mxu0 %v2893_v41 }
 0x18c   : > { %2645 = vmatpush3.bf16.msra.mxu1 %v2826_v1 }
 0x18d   : > { %2646 = vmatprep.subr.bf16.mxu1 %v2893_v41 }
 0x18e   : > { %2623 = vmatpush3.bf16.msra.mxu0 %v2817_v44 }
 0x18f   : > { %2624 = vmatprep.subr.bf16.mxu0 %v2893_v41 }
 0x192   : > { %2625 = vmatpush3.bf16.msra.mxu0 %v2818_v45 }
 0x193   : > { %2626 = vmatprep.subr.bf16.mxu0 %v2893_v41 }
 0x196   : > { %2627 = vmatpush3.bf16.msra.mxu0 %v2819_v46 }
 0x197   : > { %2628 = vmatprep.subr.bf16.mxu0 %v2893_v41 }
 0x19a   : > { %2629 = vmatpush3.bf16.msra.mxu0 %v2820_v47 }
 0x203   : > { %v2496_v50 = vpop.f32.mrb[32].mxu1 }
 0x204   : > { %v2497_v51 = vpop.f32.mrb[33].mxu1 }
 0x205   : > { %v2498_v52 = vadd.f32 %v2497_v51, %v2496_v50  ;;  %v2499_v53 = vpop.f32.mrb[34].mxu1 }
 0x206   : > { %v2500_v54 = vpop.f32.mrb[35].mxu1 }
 0x207   : > { %v2501_v56 = vadd.f32 %v2500_v54, %v2499_v53  ;;  %v1650_v18 = vadd.f32 %v2498_v52, %v2218_v15 }
 0x209   : > { %v1653_v22 = vadd.f32 %v2501_v56, %v2218_v15 }
 0x20b   : > { %v2502_v58 = vpop.f32.mrb[36].mxu1 }
 0x20c   : > { %v2503_v59 = vpop.f32.mrb[37].mxu1 }
 0x20d   : > { %v2504_v60 = vadd.f32 %v2503_v59, %v2502_v58  ;;  %v2505_v61 = vpop.f32.mrb[38].mxu1 }
 0x20e   : > { %v2506_v62 = vpop.f32.mrb[39].mxu1 }
 0x20f   : > { %v2507_v0 = vadd.f32 %v2506_v62, %v2505_v61  ;;  %v1658_v28 = vadd.f32 %v2504_v60, %v2218_v15 }
 0x211   : > { %v1661_v32 = vadd.f32 %v2507_v0, %v2218_v15 }
 0x213   : > { %v2508_v2 = vpop.f32.mrb[40].mxu1 }
 0x214   : > { %v2509_v4 = vpop.f32.mrb[41].mxu1 }
 0x215   : > { %v2510_v5 = vadd.f32 %v2509_v4, %v2508_v2  ;;  %v2511_v6 = vpop.f32.mrb[42].mxu1 }
 0x216   : > { %v2512_v7 = vpop.f32.mrb[43].mxu1 }
 0x217   : > { %v2513_v8 = vadd.f32 %v2512_v7, %v2511_v6  ;;  %v1666_v38 = vadd.f32 %v2510_v5, %v2218_v15 }
 0x219   : > { %v1669_v42 = vadd.f32 %v2513_v8, %v2218_v15 }
 0x21b   : > { %v2514_v9 = vpop.f32.mrb[44].mxu1 }
 0x21c   : > { %v2515_v10 = vpop.f32.mrb[45].mxu1 }
 0x21d   : > { %v2516_v11 = vadd.f32 %v2515_v10, %v2514_v9  ;;  %v2517_v12 = vpop.f32.mrb[46].mxu1 }
 0x21e   : > { %v2518_v13 = vpop.f32.mrb[47].mxu1 }
 0x21f   : > { %v2519_v14 = vadd.f32 %v2518_v13, %v2517_v12  ;;  %v1674_v48 = vadd.f32 %v2516_v11, %v2218_v15 }
 0x221   : > { %v1677_v52 = vadd.f32 %v2519_v14, %v2218_v15 }
 0x223   : > { %v2536_v16 = vpop.f32.mrb[48].mxu0 }
 0x224   : > { %v2537_v17 = vpop.f32.mrb[49].mxu0 }
 0x225   : > { %v2538_v19 = vadd.f32 %v2537_v17, %v2536_v16  ;;  %v2539_v20 = vpop.f32.mrb[50].mxu0 }
 0x226   : > { %v2540_v21 = vpop.f32.mrb[51].mxu0 }
 0x227   : > { %v2541_v23 = vadd.f32 %v2540_v21, %v2539_v20  ;;  %v1715_v24 = vadd.f32 %v2538_v19, %v1650_v18 }
 0x229   : > { %v1718_v25 = vadd.f32 %v2541_v23, %v1653_v22 }
 0x22b   : > { %v2542_v26 = vpop.f32.mrb[52].mxu0 }
 0x22c   : > { %v2543_v27 = vpop.f32.mrb[53].mxu0 }
 0x22d   : > { %v2544_v29 = vadd.f32 %v2543_v27, %v2542_v26  ;;  %v2545_v30 = vpop.f32.mrb[54].mxu0 }
 0x22e   : > { %v2546_v31 = vpop.f32.mrb[55].mxu0 }
 0x22f   : > { %v2547_v33 = vadd.f32 %v2546_v31, %v2545_v30  ;;  %v1723_v34 = vadd.f32 %v2544_v29, %v1658_v28 }
 0x231   : > { %v1726_v35 = vadd.f32 %v2547_v33, %v1661_v32  ;;  %v2827_v33 = vld [vmem:[%s3589_s7 + $0x30] sm:$0xff]  }
 0x232   : > { %2647 = vmatpush3.bf16.msra.mxu1 %v2827_v33 }
 0x233   : > { %v2548_v36 = vpop.f32.mrb[56].mxu0  ;;  %2648 = vmatprep.subr.bf16.mxu1 %v2893_v41  ;;  %v1958_v41 = vld [vmem:[%s3590_s8] sm:$0x1] }
 0x234   : > { %v2549_v37 = vpop.f32.mrb[57].mxu0 }
 0x235   : > { %v2550_v39 = vadd.f32 %v2549_v37, %v2548_v36  ;;  %v2551_v40 = vpop.f32.mrb[58].mxu0 }
 0x236   : > { %v2552_v3 = vpop.f32.mrb[59].mxu0 }
 0x237   : > { %v2553_v43 = vadd.f32 %v2552_v3, %v2551_v40  ;;  %v1731_v44 = vadd.f32 %v2550_v39, %v1666_v38 }
 0x239   : > { %v1734_v45 = vadd.f32 %v2553_v43, %v1669_v42 }
 0x23b   : > { %v2554_v46 = vpop.f32.mrb[60].mxu0 }
 0x23c   : > { %v2555_v47 = vpop.f32.mrb[61].mxu0 }
 0x23d   : > { %v2556_v49 = vadd.f32 %v2555_v47, %v2554_v46  ;;  %v2557_v50 = vpop.f32.mrb[62].mxu0 }
 0x23e   : > { %v2558_v51 = vpop.f32.mrb[63].mxu0 }
 0x23f   : > { %v2559_v53 = vadd.f32 %v2558_v51, %v2557_v50  ;;  %v1739_v54 = vadd.f32 %v2556_v49, %v1674_v48 }
 0x241   : > { %v1742_v55 = vadd.f32 %v2559_v53, %v1677_v52 }
 0x24a   : > { %v2608_v56 = vpop.f32.mrb[48].mxu1 }
 0x24b   : > { %v1788_v57 = vadd.f32 %v2608_v56, %v1723_v34  ;;  %v1779_v58 = vpop.f32.mrb[49].mxu1  ;;  %v2828_v34 = vld [vmem:[%s3589_s7 + $0x38] sm:$0xff]  }
 0x24c   : > { %v1780_v59 = vadd.f32 %v1779_v58, %v1715_v24  ;;  %v2609_v60 = vpop.f32.mrb[50].mxu1  ;;  %2649 = vmatpush3.bf16.msra.mxu1 %v2828_v34 }
 0x24d   : > { %v1791_v61 = vadd.f32 %v2609_v60, %v1726_v35  ;;  %v1782_v62 = vpop.f32.mrb[51].mxu1  ;;  %v1812_v2 = vmax.f32 %v1788_v57, 0.0  ;;  %v1851_v35 = vld [vmem:[%s3588_s6] sm:$0x1] }
 0x24e   : > { %v1783_v63 = vadd.f32 %v1782_v62, %v1718_v25  ;;  %v1810_v0 = vmax.f32 %v1780_v59, 0.0 }
 0x24f   : > { %v1813_v5 = vmax.f32 %v1791_v61, 0.0 }
 0x250   : > { %v1811_v1 = vmax.f32 %v1783_v63, 0.0 }
 0x252   : > { %v1818_v4 = vadd.f32 %v1811_v1, %v1810_v0 }
 0x254   : > { %v1819_v6 = vadd.f32 %v1818_v4, %v1812_v2 }
 0x256   : > { %v1820_v7 = vadd.f32 %v1819_v6, %v1813_v5 }
 0x25a   : > { %v2612_v8 = vpop.f32.mrb[52].mxu1 }
 0x25b   : > { %v1804_v9 = vadd.f32 %v2612_v8, %v1739_v54  ;;  %v1795_v10 = vpop.f32.mrb[53].mxu1 }
 0x25c   : > { %v1796_v11 = vadd.f32 %v1795_v10, %v1731_v44  ;;  %v2613_v12 = vpop.f32.mrb[54].mxu1 }
 0x25d   : > { %v1807_v13 = vadd.f32 %v2613_v12, %v1742_v55  ;;  %v1798_v14 = vpop.f32.mrb[55].mxu1  ;;  %v1816_v19 = vmax.f32 %v1804_v9, 0.0 }
 0x25e   : > { %v1814_v15 = vmax.f32 %v1796_v11, 0.0  ;;  %v1799_v16 = vadd.f32 %v1798_v14, %v1734_v45 }
 0x25f   : > { %v1817_v21 = vmax.f32 %v1807_v13, 0.0 }
 0x260   : > { %v1821_v17 = vadd.f32 %v1820_v7, %v1814_v15  ;;  %v1815_v18 = vmax.f32 %v1799_v16, 0.0 }
 0x262   : > { %v1822_v20 = vadd.f32 %v1821_v17, %v1815_v18 }
 0x264   : > { %v1823_v22 = vadd.f32 %v1822_v20, %v1816_v19 }
 0x266   : > { %v1824_v23 = vadd.f32 %v1823_v22, %v1817_v21 }
 0x268   : > { %v1825_v24 = vrot.slane %v1824_v23, 4 }
 0x26a   : > { %v1826_v25 = vadd.f32 %v1825_v24, %v1824_v23 }
 0x26c   : > { %v1827_v26 = vrot.slane %v1826_v25, 2 }
 0x26e   : > { %v1828_v27 = vadd.f32 %v1827_v26, %v1826_v25 }
 0x270   : > { %v1829_v28 = vrot.slane %v1828_v27, 1 }
 0x272   : > { %v1830_v29 = vadd.f32 %v1829_v28, %v1828_v27 }
 0x274   : > { %v1831_v30 = vmul.f32 0.015625, %v1830_v29 }
 0x276   : > { %1832 = vst [vmem:[#allocation2] sm:$0x1] %v1831_v30 }
 0x27d   : > { %v1833_v31 = vld [vmem:[#allocation2] sm:$0x1] }
 0x27e   : > { %v1834_v32 = vpack.c.bf16 %v1833_v31, %v1833_v31 }
 0x280   : > { %2631 = vmatmul.mubr.bf16.vlgmr.msra.gmra.mrb[64].mxu0 %v1834_v32 }
 0x353   : > { %v1934_v36 = vpop.f32.mrb[64].mxu0 }
 0x354   : > { %v1935_v37 = vadd.f32 %v1934_v36, %v1851_v35  ;;  %v2632_v38 = vpop.f32.mrb[65].mxu0 }
 0x355   : > { %v1937_v39 = vpop.f32.mrb[66].mxu0 }
 0x356   : > { %v1940_v40 = vmax.f32 %v1935_v37, 0.0  ;;  %v2633_v3 = vpop.f32.mrb[67].mxu0 }
 0x358   : > { %v1941_v42 = vpack.c.bf16 %v1940_v40, %v1940_v40 }
 0x35a   : > { %2651 = vmatmul.mubr.bf16.vlgmr.msra.gmra.mrb[56].mxu1 %v1941_v42 }
 0x42d   : > { %v2041_v43 = vpop.f32.mrb[56].mxu1 }
 0x42e   : > { %v2042_v44 = vadd.f32 %v2041_v43, %v1958_v41  ;;  %v2652_v45 = vpop.f32.mrb[57].mxu1 }
 0x42f   : > { %v2044_v46 = vpop.f32.mrb[58].mxu1 }
 0x430   : > { %2047 = vst [vmem:[%s521_s16] sm:$0x1] %v2042_v44  ;;  %v2653_v47 = vpop.f32.mrb[59].mxu1 }
 0x431   : > { %2842 = shalt.err (!%p2839_p5)
}
 0x432   : > { %s2843_s28 = scalar_lea.hbm %s3538_s24, 16  ;;  %s2847_s16 = scalar_lea.hbm %s3591_s9, 32 }
 0x433   : > { %p2844_p7 = scmp.ne.s32.totalorder %s3538_s24, %s2843_s28  ;;  %p2848_p12 = scmp.lt.u32.totalorder %s3538_s24, %s3591_s9 }
 0x434   : > { %p2849_p13 = scmp.lt.u32.totalorder %s2847_s16, %s2843_s28  ;;  %p2851_p1 = scmp.lt.u32.totalorder %s2843_s28, %s3538_s24 }
 0x435   : > { %p2845_p10 = pnand %p2844_p7, %p2984_p6 }
 0x436   : > { %p2850_p0 = por %p2849_p13, %p2848_p12 }
 0x437   : > { %p2846_p11 = pneg %p2845_p10 }
 0x438   : > { %p2852_p2 = por %p2851_p1, %p2850_p0 }
 0x43a   : > { %p2853_p3 = pnand %p2852_p2, %p2846_p11 }
 0x43c   : > { %2856 = shalt.err (!%p2853_p3)
}
 0x43d   : > { %2656 = dma.vmem_to_hbm [thread:$0]  (%p2984_p6), %s3540_s21, 16, %s3538_s24, %s2049_s25  }
 0x43e PF: > { %s2073_s13 = sand.u32 1, %s2879_s30   ;;  %p2659_p4 = pnand %p2124_p9, %p2988_p8 }
 0x43f   : > { %s2074_s26 = scalar_lea.sflag [#allocation5], %s2073_s13 }
 0x440   : > { %2874 = dma.done.wait (!%p2659_p4), %s2074_s26, 16  }
 0x441   : > { %2876 = vsyncadd (!%p2659_p4), %s2074_s26, 4294967280  ;;  %p19_p5 = scmp.ge.s32.totalorder %s2969_s15, 4   ;;  %s3594_s30 = smov %s2883_s10 }
 0x442   : > { %s3595_s10 = smov %s2887_s11  ;;  %s3596_s11 = smov %s2982_s18 }
 0x443   : > { %s3597_s12 = smov %s2969_s15  ;;  %21 = sbr.rel (!%p19_p5) target bundleno = 3 (0x3), region = 138 }
 0x44a   :  { %2078 = vsyncpa [#allocation5], 1 }
 0x44b   :  { %2080 = vsyncpa [#allocation5 + $0x1], 1 }

</bundles_post_ra>
